<compile_context>
chip_gen: v7x
topology: tpu7x:2x2x1
jax: 0.10.0
libtpu: 0.0.40
codegen_flags: <defaults>
</compile_context>

<pallas_src>
import functools

import jax
import jax.numpy as jnp
from jax.experimental import pallas as pl
from jax.experimental.pallas import tpu as pltpu

EPS = 1e-5  # nn.GroupNorm default eps


def _make_kernel(groups_h, groups_c, inv_nh, inv_nc):
    """Build the fused kernel body for a fixed GroupNorm configuration."""
    f32 = jnp.float32
    bf16 = jnp.bfloat16

    def kernel(x_ref, bw1_ref, w2m_ref, w20_ref, w2p_ref, bw3a_ref, bw3b_ref,
               sup_ref, sdn_ref, sblk_ref, ph_ref, pht_ref, pc_ref, pct_ref,
               g1_ref, b1_ref, g2_ref, b2_ref, g3_ref, b3_ref, o_ref):

        def gn_relu(y, groups, inv_n, p_ref, pt_ref, g_ref, b_ref):
            # GroupNorm (per sample, per channel group) + ReLU on the f32
            # (B*H, W*Cch) slab.  All statistics stay in f32.
            def stat(v):
                # per-sample column sums, replicated over each sample's rows
                s = jnp.dot(sblk_ref[...], v, preferred_element_type=f32)
                if groups == 1:          # full-slab mean: plain lane reduce
                    return jnp.sum(s, axis=1, keepdims=True) * inv_n
                g = jnp.dot(s, p_ref[...], preferred_element_type=f32)
                return jnp.dot(g, pt_ref[...], preferred_element_type=f32) * inv_n

            mean = stat(y)
            yc = y - mean
            var = stat(yc * yc)
            return jnp.maximum(
                yc * jax.lax.rsqrt(var + EPS) * g_ref[...] + b_ref[...], 0.0)

        x_bf = x_ref[...].astype(bf16)                   # (B*H, W*C) lane-dense

        # ---- block: 1x1 conv -> GroupNorm -> ReLU ----
        h1 = gn_relu(jnp.dot(x_bf, bw1_ref[...], preferred_element_type=f32),
                     groups_h, inv_nh, ph_ref, pht_ref, g1_ref, b1_ref)
        h1b = h1.astype(bf16)                            # (B*H, W*hidden)

        # ---- block: 3x3 conv (padding=1) -> GroupNorm -> ReLU ----
        # dy taps via per-sample (B*H, B*H) shift matmuls (zero rows == y
        # zero-padding, block-diagonal so samples never mix); dx taps + x
        # zero-padding are folded into block-tridiagonal weights.
        up = jnp.dot(sup_ref[...], h1b, preferred_element_type=f32).astype(bf16)
        dn = jnp.dot(sdn_ref[...], h1b, preferred_element_type=f32).astype(bf16)
        acc = jnp.dot(h1b, w20_ref[...], preferred_element_type=f32)        # dy = 0
        acc = acc + jnp.dot(up, w2p_ref[...], preferred_element_type=f32)   # dy = +1
        acc = acc + jnp.dot(dn, w2m_ref[...], preferred_element_type=f32)   # dy = -1
        h2 = gn_relu(acc, groups_h, inv_nh, ph_ref, pht_ref, g2_ref, b2_ref)
        h2b = h2.astype(bf16)

        # ---- reduce: 1x1 conv on cat([x, branch]) -> GroupNorm -> ReLU ----
        # cat @ w3 == x @ w3[:C] + branch @ w3[C:]   (no in-kernel concat)
        out = (jnp.dot(x_bf, bw3a_ref[...], preferred_element_type=f32)
               + jnp.dot(h2b, bw3b_ref[...], preferred_element_type=f32))
        out = gn_relu(out, groups_c, inv_nc, pc_ref, pct_ref, g3_ref, b3_ref)

        o_ref[...] = out.astype(o_ref.dtype)             # unmasked lane-dense store

    return kernel


def build_addition_branch_constants(params, B, C, H, W, group_channel=16):
    """One-time construction of the expanded kernel operands.  Cache the
    result and reuse it across forward calls (nothing here is on the per-call
    path)."""
    w1, w2, w3, g1, b1, g2, b2, g3, b3 = params
    hidden = w1.shape[1]
    assert hidden % group_channel == 0 and hidden >= group_channel, (
        "GroupNorm(hidden // group_channel, hidden) needs hidden >= group_channel")
    assert C % group_channel == 0 and C >= group_channel
    groups_h = hidden // group_channel
    groups_c = C // group_channel
    f32, bf16 = jnp.float32, jnp.bfloat16

    eye_w = jnp.eye(W, dtype=f32)
    e_xm1 = jnp.eye(W, k=1, dtype=f32)    # source x = out x - 1
    e_xp1 = jnp.eye(W, k=-1, dtype=f32)   # source x = out x + 1
    w2f = w2.astype(f32)

    def conv3_row_weight(w2_dy):          # w2_dy: (3, hid, hid), dx = -1, 0, +1
        return (jnp.kron(e_xm1, w2_dy[0]) + jnp.kron(eye_w, w2_dy[1])
                + jnp.kron(e_xp1, w2_dy[2]))     # (W*hid, W*hid) block-tridiag

    bw2_m1 = conv3_row_weight(w2f[0]).astype(bf16)   # dy = -1 tap
    bw2_0 = conv3_row_weight(w2f[1]).astype(bf16)    # dy =  0 tap
    bw2_p1 = conv3_row_weight(w2f[2]).astype(bf16)   # dy = +1 tap

    bw1 = jnp.kron(eye_w, w1.astype(f32)).astype(bf16)        # (W*C,   W*hid)
    bw3a = jnp.kron(eye_w, w3[:C].astype(f32)).astype(bf16)   # (W*C,   W*C)
    bw3b = jnp.kron(eye_w, w3[C:].astype(f32)).astype(bf16)   # (W*hid, W*C)

    # Per-sample y-shift matrices (zero rows at sample edges == y padding) and
    # per-sample block-ones matrix for GroupNorm row sums, batch folded in.
    eye_b = jnp.eye(B, dtype=f32)
    s_up = jnp.kron(eye_b, jnp.eye(H, k=1, dtype=f32)).astype(bf16)   # row y -> y+1
    s_dn = jnp.kron(eye_b, jnp.eye(H, k=-1, dtype=f32)).astype(bf16)  # row y -> y-1
    sblk = jnp.kron(eye_b, jnp.ones((H, H), f32))                     # (B*H, B*H)

    def group_proj(cch, groups):          # 0/1 column -> channel-group projection
        gc = cch // groups
        gid = (jnp.arange(W * cch) % cch) // gc
        p = (gid[:, None] == jnp.arange(groups)[None, :]).astype(f32)
        return p, p.T                      # (W*cch, G), (G, W*cch)

    p_h, p_ht = group_proj(hidden, groups_h)   # unused in-kernel when groups_h == 1
    p_c, p_ct = group_proj(C, groups_c)

    def tile_row(v, cch):                  # -> (1, W*cch), col x*cch + c = v[c]
        return jnp.tile(v.reshape(1, cch).astype(f32), (1, W))

    g1f, b1f = tile_row(g1, hidden), tile_row(b1, hidden)
    g2f, b2f = tile_row(g2, hidden), tile_row(b2, hidden)
    g3f, b3f = tile_row(g3, C), tile_row(b3, C)

    consts = (bw1, bw2_m1, bw2_0, bw2_p1, bw3a, bw3b, s_up, s_dn, sblk,
              p_h, p_ht, p_c, p_ct, g1f, b1f, g2f, b2f, g3f, b3f)
    meta = dict(B=B, C=C, H=H, W=W, hidden=hidden,
                groups_h=groups_h, groups_c=groups_c,
                inv_nh=1.0 / (H * W * (hidden // groups_h)),
                inv_nc=1.0 / (H * W * (C // groups_c)))
    return consts, meta


def addition_branch_apply(x_nchw, consts, meta):
    B, C, H, W = meta["B"], meta["C"], meta["H"], meta["W"]
    hidden = meta["hidden"]
    assert x_nchw.shape == (B, C, H, W)

    # NCHW -> NHWC -> batch-folded row slab (B*H, W*C); last dim multiple of 128.
    xr = jnp.transpose(x_nchw, (0, 2, 3, 1)).reshape(B * H, W * C)

    kernel = _make_kernel(meta["groups_h"], meta["groups_c"],
                          meta["inv_nh"], meta["inv_nc"])

    def const_spec(a):
        nd = a.ndim
        return pl.BlockSpec(a.shape, lambda i, _nd=nd: (0,) * _nd)

    m = B * H
    flops = 2 * m * (W * C * W * hidden                 # 1x1 in
                     + 2 * (B * H) * W * hidden         # y-shift matmuls
                     + 3 * W * hidden * W * hidden      # 3x3 dy taps
                     + W * C * W * C                    # 1x1 reduce (x term)
                     + W * hidden * W * C)              # 1x1 reduce (branch term)
    bytes_accessed = (sum(int(a.size) * a.dtype.itemsize for a in consts)
                      + int(xr.size) * xr.dtype.itemsize
                      + m * W * C * x_nchw.dtype.itemsize)
    cost = pl.CostEstimate(flops=flops,
                           transcendentals=2 * m + m * W * C,
                           bytes_accessed=bytes_accessed)

    out_f = pl.pallas_call(
        kernel,
        out_shape=jax.ShapeDtypeStruct((B * H, W * C), x_nchw.dtype),
        grid=(1,),
        in_specs=[pl.BlockSpec((B * H, W * C), lambda i: (0, 0))]
                 + [const_spec(a) for a in consts],
        out_specs=pl.BlockSpec((B * H, W * C), lambda i: (0, 0)),
        compiler_params=pltpu.CompilerParams(
            dimension_semantics=("arbitrary",),
            vmem_limit_bytes=64 * 1024 * 1024),
        cost_estimate=cost,
    )(xr, *consts)

    out = out_f.reshape(B, H, W, C)
    return jnp.transpose(out, (0, 3, 1, 2))              # NHWC -> NCHW


# ---------------- pure-JAX reference (for correctness check) ----------------
def reference_forward(x_nchw, params, group_channel=16):
    w1, w2, w3, g1, b1, g2, b2, g3, b3 = params
    B, C, H, W = x_nchw.shape
    hidden = w1.shape[1]
    x = jnp.transpose(x_nchw, (0, 2, 3, 1)).astype(jnp.float32)

    def gn(y, gamma, beta, groups):
        Bn, Hn, Wn, Cn = y.shape
        gc = Cn // groups
        yr = y.reshape(Bn, Hn * Wn, groups, gc)
        mean = yr.mean(axis=(1, 3), keepdims=True)
        var = ((yr - mean) ** 2).mean(axis=(1, 3), keepdims=True)
        yn = ((yr - mean) / jnp.sqrt(var + EPS)).reshape(Bn, Hn, Wn, Cn)
        return yn * gamma.reshape(1, 1, 1, Cn) + beta.reshape(1, 1, 1, Cn)

    h1 = jnp.einsum("bhwc,cd->bhwd", x, w1)
    h1 = jnp.maximum(gn(h1, g1[0], b1[0], hidden // group_channel), 0.0)
    hp = jnp.pad(h1, ((0, 0), (1, 1), (1, 1), (0, 0)))
    acc = jnp.zeros((B, H, W, hidden), jnp.float32)
    for dy in range(3):
        for dx in range(3):
            acc = acc + jnp.einsum("bhwc,cd->bhwd",
                                   hp[:, dy:dy + H, dx:dx + W, :], w2[dy, dx])
    h2 = jnp.maximum(gn(acc, g2[0], b2[0], hidden // group_channel), 0.0)
    cat = jnp.concatenate([x, h2], axis=-1)
    out = jnp.einsum("bhwc,cd->bhwd", cat, w3)
    out = jnp.maximum(gn(out, g3[0], b3[0], C // group_channel), 0.0)
    return jnp.transpose(out, (0, 3, 1, 2))


if __name__ == "__main__":
    # Small shapes consistent with the module: inchannels=64, reduction=4,
    # group_channel=16 -> hidden=16 (both GroupNorm group counts >= 1).
    B, C, H, W = 2, 64, 8, 8
    reduction, group_channel = 4, 16
    hidden = C // reduction

    key = jax.random.PRNGKey(0)
    ks = jax.random.split(key, 10)
    x = jax.random.normal(ks[0], (B, C, H, W), jnp.float32)

    # Deterministic synthetic parameters (channels-last weight layouts).
    w1 = jax.random.normal(ks[1], (C, hidden), jnp.float32) * 0.1            # 1x1: C->hid
    w2 = jax.random.normal(ks[2], (3, 3, hidden, hidden), jnp.float32) * 0.1 # 3x3
    w3 = jax.random.normal(ks[3], (C + hidden, C), jnp.float32) * 0.1        # 1x1: C+hid->C
    g1 = 1.0 + 0.1 * jax.random.normal(ks[4], (1, hidden), jnp.float32)
    b1 = 0.1 * jax.random.normal(ks[5], (1, hidden), jnp.float32)
    g2 = 1.0 + 0.1 * jax.random.normal(ks[6], (1, hidden), jnp.float32)
    b2 = 0.1 * jax.random.normal(ks[7], (1, hidden), jnp.float32)
    g3 = 1.0 + 0.1 * jax.random.normal(ks[8], (1, C), jnp.float32)
    b3 = 0.1 * jax.random.normal(ks[9], (1, C), jnp.float32)
    params = (w1, w2, w3, g1, b1, g2, b2, g3, b3)

    # Constants built once (hoisted off the per-call path).
    consts, meta = build_addition_branch_constants(params, B, C, H, W, group_channel)
    consts = jax.block_until_ready(consts)

    fwd = jax.jit(functools.partial(addition_branch_apply, consts=consts, meta=meta))
    out = jax.block_until_ready(fwd(x))

    ref = reference_forward(x, params, group_channel)
    max_err = float(jnp.max(jnp.abs(out - ref)))
    assert out.shape == (B, C, H, W), out.shape
    # bf16 matmul operands (f32 accumulation, f32 GN stats): tolerance loosened
    # vs the pure-f32 reference accordingly.
    assert max_err < 6e-2, f"mismatch vs reference, max abs err = {max_err}"

    print("KERNEL_OK")
</pallas_src>

<mosaic_0001>
module attributes {stable_mosaic.version = 11 : i64} {
  func.func @kernel(%arg0: i32, %arg1: memref<16x512xf32, #tpu.memory_space<vmem>>, %arg2: memref<512x128xbf16, #tpu.memory_space<vmem>>, %arg3: memref<128x128xbf16, #tpu.memory_space<vmem>>, %arg4: memref<128x128xbf16, #tpu.memory_space<vmem>>, %arg5: memref<128x128xbf16, #tpu.memory_space<vmem>>, %arg6: memref<512x512xbf16, #tpu.memory_space<vmem>>, %arg7: memref<128x512xbf16, #tpu.memory_space<vmem>>, %arg8: memref<16x16xbf16, #tpu.memory_space<vmem>>, %arg9: memref<16x16xbf16, #tpu.memory_space<vmem>>, %arg10: memref<16x16xf32, #tpu.memory_space<vmem>>, %arg11: memref<128x1xf32, #tpu.memory_space<vmem>>, %arg12: memref<1x128xf32, #tpu.memory_space<vmem>>, %arg13: memref<512x4xf32, #tpu.memory_space<vmem>>, %arg14: memref<4x512xf32, #tpu.memory_space<vmem>>, %arg15: memref<1x128xf32, #tpu.memory_space<vmem>>, %arg16: memref<1x128xf32, #tpu.memory_space<vmem>>, %arg17: memref<1x128xf32, #tpu.memory_space<vmem>>, %arg18: memref<1x128xf32, #tpu.memory_space<vmem>>, %arg19: memref<1x512xf32, #tpu.memory_space<vmem>>, %arg20: memref<1x512xf32, #tpu.memory_space<vmem>>, %arg21: memref<16x512xf32, #tpu.memory_space<vmem>>) attributes {dimension_semantics = [#tpu.dimension_semantics<arbitrary>], iteration_bounds = array<i64: 1>, scalar_prefetch = 0 : i64, scratch_operands = 0 : i64, tpu.core_type = #tpu.core_type<tc>, window_params = [{pipeline_mode = #tpu.pipeline_mode<synchronous>, transform_indices = @transform_0, window_bounds = array<i64: 16, 512>}, {pipeline_mode = #tpu.pipeline_mode<synchronous>, transform_indices = @transform_1, window_bounds = array<i64: 512, 128>}, {pipeline_mode = #tpu.pipeline_mode<synchronous>, transform_indices = @transform_2, window_bounds = array<i64: 128, 128>}, {pipeline_mode = #tpu.pipeline_mode<synchronous>, transform_indices = @transform_3, window_bounds = array<i64: 128, 128>}, {pipeline_mode = #tpu.pipeline_mode<synchronous>, transform_indices = @transform_4, window_bounds = array<i64: 128, 128>}, {pipeline_mode = #tpu.pipeline_mode<synchronous>, transform_indices = @transform_5, window_bounds = array<i64: 512, 512>}, {pipeline_mode = #tpu.pipeline_mode<synchronous>, transform_indices = @transform_6, window_bounds = array<i64: 128, 512>}, {pipeline_mode = #tpu.pipeline_mode<synchronous>, transform_indices = @transform_7, window_bounds = array<i64: 16, 16>}, {pipeline_mode = #tpu.pipeline_mode<synchronous>, transform_indices = @transform_8, window_bounds = array<i64: 16, 16>}, {pipeline_mode = #tpu.pipeline_mode<synchronous>, transform_indices = @transform_9, window_bounds = array<i64: 16, 16>}, {pipeline_mode = #tpu.pipeline_mode<synchronous>, transform_indices = @transform_10, window_bounds = array<i64: 128, 1>}, {pipeline_mode = #tpu.pipeline_mode<synchronous>, transform_indices = @transform_11, window_bounds = array<i64: 1, 128>}, {pipeline_mode = #tpu.pipeline_mode<synchronous>, transform_indices = @transform_12, window_bounds = array<i64: 512, 4>}, {pipeline_mode = #tpu.pipeline_mode<synchronous>, transform_indices = @transform_13, window_bounds = array<i64: 4, 512>}, {pipeline_mode = #tpu.pipeline_mode<synchronous>, transform_indices = @transform_14, window_bounds = array<i64: 1, 128>}, {pipeline_mode = #tpu.pipeline_mode<synchronous>, transform_indices = @transform_15, window_bounds = array<i64: 1, 128>}, {pipeline_mode = #tpu.pipeline_mode<synchronous>, transform_indices = @transform_16, window_bounds = array<i64: 1, 128>}, {pipeline_mode = #tpu.pipeline_mode<synchronous>, transform_indices = @transform_17, window_bounds = array<i64: 1, 128>}, {pipeline_mode = #tpu.pipeline_mode<synchronous>, transform_indices = @transform_18, window_bounds = array<i64: 1, 512>}, {pipeline_mode = #tpu.pipeline_mode<synchronous>, transform_indices = @transform_19, window_bounds = array<i64: 1, 512>}, {pipeline_mode = #tpu.pipeline_mode<synchronous>, transform_indices = @transform_20, window_bounds = array<i64: 16, 512>}]} {
    %c0 = arith.constant 0 : index
    %c0_0 = arith.constant 0 : index
    %0 = vector.load %arg1[%c0, %c0_0] : memref<16x512xf32, #tpu.memory_space<vmem>>, vector<16x512xf32>
    %1 = arith.truncf %0 : vector<16x512xf32> to vector<16x512xbf16>
    %c0_1 = arith.constant 0 : index
    %c0_2 = arith.constant 0 : index
    %2 = vector.load %arg2[%c0_1, %c0_2] : memref<512x128xbf16, #tpu.memory_space<vmem>>, vector<512x128xbf16>
    %cst = arith.constant dense<0.000000e+00> : vector<16x128xf32>
    %3 = tpu.matmul %1, %2, %cst {dimension_numbers = #tpu.dot_dimension_numbers<[1], [0], [0], [1], [0, 0, 1, 1], [], []>} : vector<16x512xbf16>, vector<512x128xbf16>, vector<16x128xf32> -> vector<16x128xf32>
    %c0_3 = arith.constant 0 : index
    %c0_4 = arith.constant 0 : index
    %4 = vector.load %arg10[%c0_3, %c0_4] : memref<16x16xf32, #tpu.memory_space<vmem>>, vector<16x16xf32>
    %cst_5 = arith.constant dense<0.000000e+00> : vector<16x128xf32>
    %5 = tpu.matmul %4, %3, %cst_5 {dimension_numbers = #tpu.dot_dimension_numbers<[1], [0], [0], [1], [0, 0, 1, 1], [], []>} : vector<16x16xf32>, vector<16x128xf32>, vector<16x128xf32> -> vector<16x128xf32>
    %cst_6 = arith.constant dense<0.000000e+00> : vector<16xf32>
    %6 = vector.multi_reduction <add>, %5, %cst_6 [1] : vector<16x128xf32> to vector<16xf32>
    %7 = vector.shape_cast %6 : vector<16xf32> to vector<16x1xf32>
    %cst_7 = arith.constant 9.765625E-4 : f32
    %8 = vector.broadcast %cst_7 : f32 to vector<16x1xf32>
    %9 = arith.mulf %7, %8 : vector<16x1xf32>
    %10 = vector.broadcast %9 : vector<16x1xf32> to vector<16x128xf32>
    %11 = arith.subf %3, %10 : vector<16x128xf32>
    %12 = arith.mulf %11, %11 : vector<16x128xf32>
    %c0_8 = arith.constant 0 : index
    %c0_9 = arith.constant 0 : index
    %13 = vector.load %arg10[%c0_8, %c0_9] : memref<16x16xf32, #tpu.memory_space<vmem>>, vector<16x16xf32>
    %cst_10 = arith.constant dense<0.000000e+00> : vector<16x128xf32>
    %14 = tpu.matmul %13, %12, %cst_10 {dimension_numbers = #tpu.dot_dimension_numbers<[1], [0], [0], [1], [0, 0, 1, 1], [], []>} : vector<16x16xf32>, vector<16x128xf32>, vector<16x128xf32> -> vector<16x128xf32>
    %cst_11 = arith.constant dense<0.000000e+00> : vector<16xf32>
    %15 = vector.multi_reduction <add>, %14, %cst_11 [1] : vector<16x128xf32> to vector<16xf32>
    %16 = vector.shape_cast %15 : vector<16xf32> to vector<16x1xf32>
    %cst_12 = arith.constant 9.765625E-4 : f32
    %17 = vector.broadcast %cst_12 : f32 to vector<16x1xf32>
    %18 = arith.mulf %16, %17 : vector<16x1xf32>
    %cst_13 = arith.constant 9.99999974E-6 : f32
    %19 = vector.broadcast %cst_13 : f32 to vector<16x1xf32>
    %20 = arith.addf %18, %19 : vector<16x1xf32>
    %21 = math.rsqrt %20 : vector<16x1xf32>
    %22 = vector.broadcast %21 : vector<16x1xf32> to vector<16x128xf32>
    %23 = arith.mulf %11, %22 : vector<16x128xf32>
    %c0_14 = arith.constant 0 : index
    %c0_15 = arith.constant 0 : index
    %24 = vector.load %arg15[%c0_14, %c0_15] : memref<1x128xf32, #tpu.memory_space<vmem>>, vector<1x128xf32>
    %25 = vector.broadcast %24 : vector<1x128xf32> to vector<16x128xf32>
    %26 = arith.mulf %23, %25 : vector<16x128xf32>
    %c0_16 = arith.constant 0 : index
    %c0_17 = arith.constant 0 : index
    %27 = vector.load %arg16[%c0_16, %c0_17] : memref<1x128xf32, #tpu.memory_space<vmem>>, vector<1x128xf32>
    %28 = vector.broadcast %27 : vector<1x128xf32> to vector<16x128xf32>
    %29 = arith.addf %26, %28 : vector<16x128xf32>
    %cst_18 = arith.constant 0.000000e+00 : f32
    %30 = vector.broadcast %cst_18 : f32 to vector<16x128xf32>
    %31 = arith.maximumf %29, %30 : vector<16x128xf32>
    %32 = arith.truncf %31 : vector<16x128xf32> to vector<16x128xbf16>
    %c0_19 = arith.constant 0 : index
    %c0_20 = arith.constant 0 : index
    %33 = vector.load %arg8[%c0_19, %c0_20] : memref<16x16xbf16, #tpu.memory_space<vmem>>, vector<16x16xbf16>
    %cst_21 = arith.constant dense<0.000000e+00> : vector<16x128xf32>
    %34 = tpu.matmul %33, %32, %cst_21 {dimension_numbers = #tpu.dot_dimension_numbers<[1], [0], [0], [1], [0, 0, 1, 1], [], []>} : vector<16x16xbf16>, vector<16x128xbf16>, vector<16x128xf32> -> vector<16x128xf32>
    %35 = arith.truncf %34 : vector<16x128xf32> to vector<16x128xbf16>
    %c0_22 = arith.constant 0 : index
    %c0_23 = arith.constant 0 : index
    %36 = vector.load %arg9[%c0_22, %c0_23] : memref<16x16xbf16, #tpu.memory_space<vmem>>, vector<16x16xbf16>
    %cst_24 = arith.constant dense<0.000000e+00> : vector<16x128xf32>
    %37 = tpu.matmul %36, %32, %cst_24 {dimension_numbers = #tpu.dot_dimension_numbers<[1], [0], [0], [1], [0, 0, 1, 1], [], []>} : vector<16x16xbf16>, vector<16x128xbf16>, vector<16x128xf32> -> vector<16x128xf32>
    %38 = arith.truncf %37 : vector<16x128xf32> to vector<16x128xbf16>
    %c0_25 = arith.constant 0 : index
    %c0_26 = arith.constant 0 : index
    %39 = vector.load %arg4[%c0_25, %c0_26] : memref<128x128xbf16, #tpu.memory_space<vmem>>, vector<128x128xbf16>
    %cst_27 = arith.constant dense<0.000000e+00> : vector<16x128xf32>
    %40 = tpu.matmul %32, %39, %cst_27 {dimension_numbers = #tpu.dot_dimension_numbers<[1], [0], [0], [1], [0, 0, 1, 1], [], []>} : vector<16x128xbf16>, vector<128x128xbf16>, vector<16x128xf32> -> vector<16x128xf32>
    %c0_28 = arith.constant 0 : index
    %c0_29 = arith.constant 0 : index
    %41 = vector.load %arg5[%c0_28, %c0_29] : memref<128x128xbf16, #tpu.memory_space<vmem>>, vector<128x128xbf16>
    %cst_30 = arith.constant dense<0.000000e+00> : vector<16x128xf32>
    %42 = tpu.matmul %35, %41, %cst_30 {dimension_numbers = #tpu.dot_dimension_numbers<[1], [0], [0], [1], [0, 0, 1, 1], [], []>} : vector<16x128xbf16>, vector<128x128xbf16>, vector<16x128xf32> -> vector<16x128xf32>
    %43 = arith.addf %40, %42 : vector<16x128xf32>
    %c0_31 = arith.constant 0 : index
    %c0_32 = arith.constant 0 : index
    %44 = vector.load %arg3[%c0_31, %c0_32] : memref<128x128xbf16, #tpu.memory_space<vmem>>, vector<128x128xbf16>
    %cst_33 = arith.constant dense<0.000000e+00> : vector<16x128xf32>
    %45 = tpu.matmul %38, %44, %cst_33 {dimension_numbers = #tpu.dot_dimension_numbers<[1], [0], [0], [1], [0, 0, 1, 1], [], []>} : vector<16x128xbf16>, vector<128x128xbf16>, vector<16x128xf32> -> vector<16x128xf32>
    %46 = arith.addf %43, %45 : vector<16x128xf32>
    %c0_34 = arith.constant 0 : index
    %c0_35 = arith.constant 0 : index
    %47 = vector.load %arg10[%c0_34, %c0_35] : memref<16x16xf32, #tpu.memory_space<vmem>>, vector<16x16xf32>
    %cst_36 = arith.constant dense<0.000000e+00> : vector<16x128xf32>
    %48 = tpu.matmul %47, %46, %cst_36 {dimension_numbers = #tpu.dot_dimension_numbers<[1], [0], [0], [1], [0, 0, 1, 1], [], []>} : vector<16x16xf32>, vector<16x128xf32>, vector<16x128xf32> -> vector<16x128xf32>
    %cst_37 = arith.constant dense<0.000000e+00> : vector<16xf32>
    %49 = vector.multi_reduction <add>, %48, %cst_37 [1] : vector<16x128xf32> to vector<16xf32>
    %50 = vector.shape_cast %49 : vector<16xf32> to vector<16x1xf32>
    %cst_38 = arith.constant 9.765625E-4 : f32
    %51 = vector.broadcast %cst_38 : f32 to vector<16x1xf32>
    %52 = arith.mulf %50, %51 : vector<16x1xf32>
    %53 = vector.broadcast %52 : vector<16x1xf32> to vector<16x128xf32>
    %54 = arith.subf %46, %53 : vector<16x128xf32>
    %55 = arith.mulf %54, %54 : vector<16x128xf32>
    %c0_39 = arith.constant 0 : index
    %c0_40 = arith.constant 0 : index
    %56 = vector.load %arg10[%c0_39, %c0_40] : memref<16x16xf32, #tpu.memory_space<vmem>>, vector<16x16xf32>
    %cst_41 = arith.constant dense<0.000000e+00> : vector<16x128xf32>
    %57 = tpu.matmul %56, %55, %cst_41 {dimension_numbers = #tpu.dot_dimension_numbers<[1], [0], [0], [1], [0, 0, 1, 1], [], []>} : vector<16x16xf32>, vector<16x128xf32>, vector<16x128xf32> -> vector<16x128xf32>
    %cst_42 = arith.constant dense<0.000000e+00> : vector<16xf32>
    %58 = vector.multi_reduction <add>, %57, %cst_42 [1] : vector<16x128xf32> to vector<16xf32>
    %59 = vector.shape_cast %58 : vector<16xf32> to vector<16x1xf32>
    %cst_43 = arith.constant 9.765625E-4 : f32
    %60 = vector.broadcast %cst_43 : f32 to vector<16x1xf32>
    %61 = arith.mulf %59, %60 : vector<16x1xf32>
    %cst_44 = arith.constant 9.99999974E-6 : f32
    %62 = vector.broadcast %cst_44 : f32 to vector<16x1xf32>
    %63 = arith.addf %61, %62 : vector<16x1xf32>
    %64 = math.rsqrt %63 : vector<16x1xf32>
    %65 = vector.broadcast %64 : vector<16x1xf32> to vector<16x128xf32>
    %66 = arith.mulf %54, %65 : vector<16x128xf32>
    %c0_45 = arith.constant 0 : index
    %c0_46 = arith.constant 0 : index
    %67 = vector.load %arg17[%c0_45, %c0_46] : memref<1x128xf32, #tpu.memory_space<vmem>>, vector<1x128xf32>
    %68 = vector.broadcast %67 : vector<1x128xf32> to vector<16x128xf32>
    %69 = arith.mulf %66, %68 : vector<16x128xf32>
    %c0_47 = arith.constant 0 : index
    %c0_48 = arith.constant 0 : index
    %70 = vector.load %arg18[%c0_47, %c0_48] : memref<1x128xf32, #tpu.memory_space<vmem>>, vector<1x128xf32>
    %71 = vector.broadcast %70 : vector<1x128xf32> to vector<16x128xf32>
    %72 = arith.addf %69, %71 : vector<16x128xf32>
    %cst_49 = arith.constant 0.000000e+00 : f32
    %73 = vector.broadcast %cst_49 : f32 to vector<16x128xf32>
    %74 = arith.maximumf %72, %73 : vector<16x128xf32>
    %75 = arith.truncf %74 : vector<16x128xf32> to vector<16x128xbf16>
    %c0_50 = arith.constant 0 : index
    %c0_51 = arith.constant 0 : index
    %76 = vector.load %arg6[%c0_50, %c0_51] : memref<512x512xbf16, #tpu.memory_space<vmem>>, vector<512x512xbf16>
    %cst_52 = arith.constant dense<0.000000e+00> : vector<16x512xf32>
    %77 = tpu.matmul %1, %76, %cst_52 {dimension_numbers = #tpu.dot_dimension_numbers<[1], [0], [0], [1], [0, 0, 1, 1], [], []>} : vector<16x512xbf16>, vector<512x512xbf16>, vector<16x512xf32> -> vector<16x512xf32>
    %c0_53 = arith.constant 0 : index
    %c0_54 = arith.constant 0 : index
    %78 = vector.load %arg7[%c0_53, %c0_54] : memref<128x512xbf16, #tpu.memory_space<vmem>>, vector<128x512xbf16>
    %cst_55 = arith.constant dense<0.000000e+00> : vector<16x512xf32>
    %79 = tpu.matmul %75, %78, %cst_55 {dimension_numbers = #tpu.dot_dimension_numbers<[1], [0], [0], [1], [0, 0, 1, 1], [], []>} : vector<16x128xbf16>, vector<128x512xbf16>, vector<16x512xf32> -> vector<16x512xf32>
    %80 = arith.addf %77, %79 : vector<16x512xf32>
    %c0_56 = arith.constant 0 : index
    %c0_57 = arith.constant 0 : index
    %81 = vector.load %arg10[%c0_56, %c0_57] : memref<16x16xf32, #tpu.memory_space<vmem>>, vector<16x16xf32>
    %cst_58 = arith.constant dense<0.000000e+00> : vector<16x512xf32>
    %82 = tpu.matmul %81, %80, %cst_58 {dimension_numbers = #tpu.dot_dimension_numbers<[1], [0], [0], [1], [0, 0, 1, 1], [], []>} : vector<16x16xf32>, vector<16x512xf32>, vector<16x512xf32> -> vector<16x512xf32>
    %c0_59 = arith.constant 0 : index
    %c0_60 = arith.constant 0 : index
    %83 = vector.load %arg13[%c0_59, %c0_60] : memref<512x4xf32, #tpu.memory_space<vmem>>, vector<512x4xf32>
    %cst_61 = arith.constant dense<0.000000e+00> : vector<16x4xf32>
    %84 = tpu.matmul %82, %83, %cst_61 {dimension_numbers = #tpu.dot_dimension_numbers<[1], [0], [0], [1], [0, 0, 1, 1], [], []>} : vector<16x512xf32>, vector<512x4xf32>, vector<16x4xf32> -> vector<16x4xf32>
    %c0_62 = arith.constant 0 : index
    %c0_63 = arith.constant 0 : index
    %85 = vector.load %arg14[%c0_62, %c0_63] : memref<4x512xf32, #tpu.memory_space<vmem>>, vector<4x512xf32>
    %cst_64 = arith.constant dense<0.000000e+00> : vector<16x512xf32>
    %86 = tpu.matmul %84, %85, %cst_64 {dimension_numbers = #tpu.dot_dimension_numbers<[1], [0], [0], [1], [0, 0, 1, 1], [], []>} : vector<16x4xf32>, vector<4x512xf32>, vector<16x512xf32> -> vector<16x512xf32>
    %cst_65 = arith.constant 9.765625E-4 : f32
    %87 = vector.broadcast %cst_65 : f32 to vector<16x512xf32>
    %88 = arith.mulf %86, %87 : vector<16x512xf32>
    %89 = arith.subf %80, %88 : vector<16x512xf32>
    %90 = arith.mulf %89, %89 : vector<16x512xf32>
    %c0_66 = arith.constant 0 : index
    %c0_67 = arith.constant 0 : index
    %91 = vector.load %arg10[%c0_66, %c0_67] : memref<16x16xf32, #tpu.memory_space<vmem>>, vector<16x16xf32>
    %cst_68 = arith.constant dense<0.000000e+00> : vector<16x512xf32>
    %92 = tpu.matmul %91, %90, %cst_68 {dimension_numbers = #tpu.dot_dimension_numbers<[1], [0], [0], [1], [0, 0, 1, 1], [], []>} : vector<16x16xf32>, vector<16x512xf32>, vector<16x512xf32> -> vector<16x512xf32>
    %c0_69 = arith.constant 0 : index
    %c0_70 = arith.constant 0 : index
    %93 = vector.load %arg13[%c0_69, %c0_70] : memref<512x4xf32, #tpu.memory_space<vmem>>, vector<512x4xf32>
    %cst_71 = arith.constant dense<0.000000e+00> : vector<16x4xf32>
    %94 = tpu.matmul %92, %93, %cst_71 {dimension_numbers = #tpu.dot_dimension_numbers<[1], [0], [0], [1], [0, 0, 1, 1], [], []>} : vector<16x512xf32>, vector<512x4xf32>, vector<16x4xf32> -> vector<16x4xf32>
    %c0_72 = arith.constant 0 : index
    %c0_73 = arith.constant 0 : index
    %95 = vector.load %arg14[%c0_72, %c0_73] : memref<4x512xf32, #tpu.memory_space<vmem>>, vector<4x512xf32>
    %cst_74 = arith.constant dense<0.000000e+00> : vector<16x512xf32>
    %96 = tpu.matmul %94, %95, %cst_74 {dimension_numbers = #tpu.dot_dimension_numbers<[1], [0], [0], [1], [0, 0, 1, 1], [], []>} : vector<16x4xf32>, vector<4x512xf32>, vector<16x512xf32> -> vector<16x512xf32>
    %cst_75 = arith.constant 9.765625E-4 : f32
    %97 = vector.broadcast %cst_75 : f32 to vector<16x512xf32>
    %98 = arith.mulf %96, %97 : vector<16x512xf32>
    %cst_76 = arith.constant 9.99999974E-6 : f32
    %99 = vector.broadcast %cst_76 : f32 to vector<16x512xf32>
    %100 = arith.addf %98, %99 : vector<16x512xf32>
    %101 = math.rsqrt %100 : vector<16x512xf32>
    %102 = arith.mulf %89, %101 : vector<16x512xf32>
    %c0_77 = arith.constant 0 : index
    %c0_78 = arith.constant 0 : index
    %103 = vector.load %arg19[%c0_77, %c0_78] : memref<1x512xf32, #tpu.memory_space<vmem>>, vector<1x512xf32>
    %104 = vector.broadcast %103 : vector<1x512xf32> to vector<16x512xf32>
    %105 = arith.mulf %102, %104 : vector<16x512xf32>
    %c0_79 = arith.constant 0 : index
    %c0_80 = arith.constant 0 : index
    %106 = vector.load %arg20[%c0_79, %c0_80] : memref<1x512xf32, #tpu.memory_space<vmem>>, vector<1x512xf32>
    %107 = vector.broadcast %106 : vector<1x512xf32> to vector<16x512xf32>
    %108 = arith.addf %105, %107 : vector<16x512xf32>
    %cst_81 = arith.constant 0.000000e+00 : f32
    %109 = vector.broadcast %cst_81 : f32 to vector<16x512xf32>
    %110 = arith.maximumf %108, %109 : vector<16x512xf32>
    %c0_82 = arith.constant 0 : index
    %c0_83 = arith.constant 0 : index
    %111 = vector.load %arg21[%c0_82, %c0_83] : memref<16x512xf32, #tpu.memory_space<vmem>>, vector<16x512xf32>
    tpu.vector_store %arg21[%c0_82, %c0_83], %110 {strides = array<i32>} : memref<16x512xf32, #tpu.memory_space<vmem>>, vector<16x512xf32>,
    return
  }
  func.func @transform_0(%arg0: i32) -> (i32, i32) {
    %c0_i32 = arith.constant 0 : i32
    %c0_i32_0 = arith.constant 0 : i32
    %c0_i32_1 = arith.constant 0 : i32
    return %c0_i32, %c0_i32_0 : i32, i32
  }
  func.func @transform_1(%arg0: i32) -> (i32, i32) {
    %c0_i32 = arith.constant 0 : i32
    %c0_i32_0 = arith.constant 0 : i32
    %c0_i32_1 = arith.constant 0 : i32
    return %c0_i32, %c0_i32_0 : i32, i32
  }
  func.func @transform_2(%arg0: i32) -> (i32, i32) {
    %c0_i32 = arith.constant 0 : i32
    %c0_i32_0 = arith.constant 0 : i32
    %c0_i32_1 = arith.constant 0 : i32
    return %c0_i32, %c0_i32_0 : i32, i32
  }
  func.func @transform_3(%arg0: i32) -> (i32, i32) {
    %c0_i32 = arith.constant 0 : i32
    %c0_i32_0 = arith.constant 0 : i32
    %c0_i32_1 = arith.constant 0 : i32
    return %c0_i32, %c0_i32_0 : i32, i32
  }
  func.func @transform_4(%arg0: i32) -> (i32, i32) {
    %c0_i32 = arith.constant 0 : i32
    %c0_i32_0 = arith.constant 0 : i32
    %c0_i32_1 = arith.constant 0 : i32
    return %c0_i32, %c0_i32_0 : i32, i32
  }
  func.func @transform_5(%arg0: i32) -> (i32, i32) {
    %c0_i32 = arith.constant 0 : i32
    %c0_i32_0 = arith.constant 0 : i32
    %c0_i32_1 = arith.constant 0 : i32
    return %c0_i32, %c0_i32_0 : i32, i32
  }
  func.func @transform_6(%arg0: i32) -> (i32, i32) {
    %c0_i32 = arith.constant 0 : i32
    %c0_i32_0 = arith.constant 0 : i32
    %c0_i32_1 = arith.constant 0 : i32
    return %c0_i32, %c0_i32_0 : i32, i32
  }
  func.func @transform_7(%arg0: i32) -> (i32, i32) {
    %c0_i32 = arith.constant 0 : i32
    %c0_i32_0 = arith.constant 0 : i32
    %c0_i32_1 = arith.constant 0 : i32
    return %c0_i32, %c0_i32_0 : i32, i32
  }
  func.func @transform_8(%arg0: i32) -> (i32, i32) {
    %c0_i32 = arith.constant 0 : i32
    %c0_i32_0 = arith.constant 0 : i32
    %c0_i32_1 = arith.constant 0 : i32
    return %c0_i32, %c0_i32_0 : i32, i32
  }
  func.func @transform_9(%arg0: i32) -> (i32, i32) {
    %c0_i32 = arith.constant 0 : i32
    %c0_i32_0 = arith.constant 0 : i32
    %c0_i32_1 = arith.constant 0 : i32
    return %c0_i32, %c0_i32_0 : i32, i32
  }
  func.func @transform_10(%arg0: i32) -> (i32, i32) {
    %c0_i32 = arith.constant 0 : i32
    %c0_i32_0 = arith.constant 0 : i32
    %c0_i32_1 = arith.constant 0 : i32
    return %c0_i32, %c0_i32_0 : i32, i32
  }
  func.func @transform_11(%arg0: i32) -> (i32, i32) {
    %c0_i32 = arith.constant 0 : i32
    %c0_i32_0 = arith.constant 0 : i32
    %c0_i32_1 = arith.constant 0 : i32
    return %c0_i32, %c0_i32_0 : i32, i32
  }
  func.func @transform_12(%arg0: i32) -> (i32, i32) {
    %c0_i32 = arith.constant 0 : i32
    %c0_i32_0 = arith.constant 0 : i32
    %c0_i32_1 = arith.constant 0 : i32
    return %c0_i32, %c0_i32_0 : i32, i32
  }
  func.func @transform_13(%arg0: i32) -> (i32, i32) {
    %c0_i32 = arith.constant 0 : i32
    %c0_i32_0 = arith.constant 0 : i32
    %c0_i32_1 = arith.constant 0 : i32
    return %c0_i32, %c0_i32_0 : i32, i32
  }
  func.func @transform_14(%arg0: i32) -> (i32, i32) {
    %c0_i32 = arith.constant 0 : i32
    %c0_i32_0 = arith.constant 0 : i32
    %c0_i32_1 = arith.constant 0 : i32
    return %c0_i32, %c0_i32_0 : i32, i32
  }
  func.func @transform_15(%arg0: i32) -> (i32, i32) {
    %c0_i32 = arith.constant 0 : i32
    %c0_i32_0 = arith.constant 0 : i32
    %c0_i32_1 = arith.constant 0 : i32
    return %c0_i32, %c0_i32_0 : i32, i32
  }
  func.func @transform_16(%arg0: i32) -> (i32, i32) {
    %c0_i32 = arith.constant 0 : i32
    %c0_i32_0 = arith.constant 0 : i32
    %c0_i32_1 = arith.constant 0 : i32
    return %c0_i32, %c0_i32_0 : i32, i32
  }
  func.func @transform_17(%arg0: i32) -> (i32, i32) {
    %c0_i32 = arith.constant 0 : i32
    %c0_i32_0 = arith.constant 0 : i32
    %c0_i32_1 = arith.constant 0 : i32
    return %c0_i32, %c0_i32_0 : i32, i32
  }
  func.func @transform_18(%arg0: i32) -> (i32, i32) {
    %c0_i32 = arith.constant 0 : i32
    %c0_i32_0 = arith.constant 0 : i32
    %c0_i32_1 = arith.constant 0 : i32
    return %c0_i32, %c0_i32_0 : i32, i32
  }
  func.func @transform_19(%arg0: i32) -> (i32, i32) {
    %c0_i32 = arith.constant 0 : i32
    %c0_i32_0 = arith.constant 0 : i32
    %c0_i32_1 = arith.constant 0 : i32
    return %c0_i32, %c0_i32_0 : i32, i32
  }
  func.func @transform_20(%arg0: i32) -> (i32, i32) {
    %c0_i32 = arith.constant 0 : i32
    %c0_i32_0 = arith.constant 0 : i32
    %c0_i32_1 = arith.constant 0 : i32
    return %c0_i32, %c0_i32_0 : i32, i32
  }
}

</mosaic_0001>

<bundles_post_ra>
// kernel: addition_branch_apply.1
= control target key start
LH: loop header
LB: loop body
LE: loop exit
PB: predicated region body
PF: predicated region fallthrough
CT: control target
= control target key end

     0   :  { %s6304_s0 = inlined_call_operand.hbm [shape: f32[16,512], index: 0, kind: input, shape index: {}]   ;;  %s6305_s1 = inlined_call_operand.hbm [shape: bf16[512,128], index: 1, kind: input, shape index: {}]   ;;  %s6306_s2 = inlined_call_operand.hbm [shape: bf16[128,128], index: 2, kind: input, shape index: {}]   ;;  %s6307_s3 = inlined_call_operand.hbm [shape: bf16[128,128], index: 3, kind: input, shape index: {}]   ;;  %s6308_s4 = inlined_call_operand.hbm [shape: bf16[128,128], index: 4, kind: input, shape index: {}]   ;;  %s6309_s5 = inlined_call_operand.hbm [shape: bf16[512,512], index: 5, kind: input, shape index: {}]   ;;  %s6310_s6 = inlined_call_operand.hbm [shape: bf16[128,512], index: 6, kind: input, shape index: {}]   ;;  %s6311_s7 = inlined_call_operand.hbm [shape: bf16[16,16], index: 7, kind: input, shape index: {}]   ;;  %s6312_s8 = inlined_call_operand.hbm [shape: bf16[16,16], index: 8, kind: input, shape index: {}]   ;;  %s6313_s9 = inlined_call_operand.hbm [shape: f32[16,16], index: 9, kind: input, shape index: {}]   ;;  %s6314_s10 = inlined_call_operand.hbm [shape: f32[128,1], index: 10, kind: input, shape index: {}]   ;;  %s6315_s11 = inlined_call_operand.hbm [shape: f32[1,128], index: 11, kind: input, shape index: {}]   ;;  %s6316_s12 = inlined_call_operand.hbm [shape: f32[512,4], index: 12, kind: input, shape index: {}]   ;;  %s6317_s13 = inlined_call_operand.hbm [shape: f32[4,512], index: 13, kind: input, shape index: {}]   ;;  %s6318_s14 = inlined_call_operand.hbm [shape: f32[1,128], index: 14, kind: input, shape index: {}]   ;;  %s6319_s15 = inlined_call_operand.hbm [shape: f32[1,128], index: 15, kind: input, shape index: {}]   ;;  %s6320_s16 = inlined_call_operand.hbm [shape: f32[1,128], index: 16, kind: input, shape index: {}]   ;;  %s6321_s17 = inlined_call_operand.hbm [shape: f32[1,128], index: 17, kind: input, shape index: {}]   ;;  %s6322_s18 = inlined_call_operand.hbm [shape: f32[1,512], index: 18, kind: input, shape index: {}]   ;;  %s6323_s19 = inlined_call_operand.hbm [shape: f32[1,512], index: 19, kind: input, shape index: {}]   ;;  %s6324_s20 = inlined_call_operand.hbm [shape: f32[16,512], index: 20, kind: output, shape index: {}]  }
   0x1   :  { %6333 = sst [smem:[#allocation47_spill]] %s6304_s0 }
   0x2   :  { %6334 = sst [smem:[#allocation48_spill]] %s6305_s1 }
   0x3   :  { %6335 = sst [smem:[#allocation49_spill]] %s6306_s2 }
   0x4   :  { %6336 = sst [smem:[#allocation50_spill]] %s6307_s3 }
   0x5   :  { %6337 = sst [smem:[#allocation51_spill]] %s6308_s4 }
   0x6   :  { %6338 = sst [smem:[#allocation52_spill]] %s6322_s18 }
   0x7   :  { %6339 = sst [smem:[#allocation53_spill]] %s6323_s19 }
   0x8   :  { %6340 = sst [smem:[#allocation54_spill]] %s6324_s20 }
   0x9   :  { %25 = vsyncpa [#allocation3], 0 }
   0xa   :  { %26 = vsyncpa [#allocation6], 0 }
   0xb   :  { %27 = vsyncpa [#allocation9], 0 }
   0xc   :  { %28 = vsyncpa [#allocation12], 0 }
   0xd   :  { %29 = vsyncpa [#allocation15], 0 }
   0xe   :  { %30 = vsyncpa [#allocation18], 0 }
   0xf   :  { %31 = vsyncpa [#allocation21], 0 }
  0x10   :  { %32 = vsyncpa [#allocation24], 0 }
  0x11   :  { %33 = vsyncpa [#allocation27], 0 }
  0x12   :  { %34 = vsyncpa [#allocation30], 0 }
  0x13   :  { %35 = vsyncpa [#allocation33], 0 }
  0x14   :  { %36 = vsyncpa [#allocation4], 0  ;;  %s5500_s1 = smov [#allocation5]   ;;  %s6341_s2 = sld [smem:[#allocation48_spill]] }
  0x15   :  { %s54_s22 = sshll.u32 %s5500_s1, 4  ;;  %s55_s22 = int_to_ptr.vmem [resolvable:$true] %s54_s22 }
  0x1a   :  { %s5014_s25 = scalar_lea.hbm %s6341_s2, 4096 }
  0x1b   :  { %p5015_p0 = scmp.ne.s32.totalorder %s6341_s2, %s5014_s25  ;;  %p5018_p1 = scmp.lt.u32.totalorder %s5014_s25, %s6341_s2 }
  0x1d   :  { %p5020_p2 = pnand %p5018_p1, %p5015_p0 }
  0x1f   :  { %5023 = shalt.err (!%p5020_p2)
}
  0x20   :  { %s5024_s4 = scalar_lea.vmem %s55_s22, 4096  ;;  %p5029_p4 = scmp.lt.s32.totalorder %s55_s22, %s55_s22 }
  0x21   :  { %p5025_p3 = scmp.ne.s32.totalorder %s55_s22, %s5024_s4  ;;  %p5030_p5 = scmp.lt.s32.totalorder %s5024_s4, %s5024_s4 }
  0x23   :  { %p5031_p6 = por %p5030_p5, %p5029_p4 }
  0x25   :  { %p5032_p7 = pnand %p5031_p6, %p5025_p3 }
  0x27   :  { %5035 = shalt.err (!%p5032_p7)
}
  0x28   :  { %s5501_s29 = smov 64   ;;  %s5502_s30 = smov 4  }
  0x29   :  { %60 = dma.hbm_to_vmem [thread:$0]  %s6341_s2, 4096, %s55_s22, [#allocation6], %s5501_s29, %s5501_s29, %s5502_s30  }
  0x2a   :  { %s5503_s1 = smov [#allocation8]   ;;  %s5504_s24 = smov [#allocation11]  }
  0x2b   :  { %s78_s23 = sshll.u32 %s5503_s1, 4  ;;  %s102_s25 = sshll.u32 %s5504_s24, 4  ;;  %s79_s23 = int_to_ptr.vmem [resolvable:$true] %s78_s23  ;;  %s103_s25 = int_to_ptr.vmem [resolvable:$true] %s102_s25 }
  0x2c   :  { %s6342_s27 = sld [smem:[#allocation50_spill]] }
  0x32   :  { %s5036_s28 = scalar_lea.hbm %s6342_s27, 1024 }
  0x33   :  { %p5037_p8 = scmp.ne.s32.totalorder %s6342_s27, %s5036_s28  ;;  %p5040_p9 = scmp.lt.u32.totalorder %s5036_s28, %s6342_s27 }
  0x35   :  { %p5042_p10 = pnand %p5040_p9, %p5037_p8 }
  0x37   :  { %5045 = shalt.err (!%p5042_p10)
}
  0x38   :  { %s5046_s22 = scalar_lea.vmem %s79_s23, 1024  ;;  %p5051_p12 = scmp.lt.s32.totalorder %s79_s23, %s79_s23 }
  0x39   :  { %p5047_p11 = scmp.ne.s32.totalorder %s79_s23, %s5046_s22  ;;  %p5052_p13 = scmp.lt.s32.totalorder %s5046_s22, %s5046_s22 }
  0x3b   :  { %p5053_p0 = por %p5052_p13, %p5051_p12 }
  0x3d   :  { %p5054_p1 = pnand %p5053_p0, %p5047_p11 }
  0x3f   :  { %5057 = shalt.err (!%p5054_p1)
}
  0x40   :  { %84 = dma.hbm_to_vmem [thread:$0]  %s6342_s27, 1024, %s79_s23, [#allocation9], %s5501_s29, %s5501_s29, %s5502_s30  }
  0x41   :  { %s5058_s19 = scalar_lea.hbm %s6309_s5, 16384 }
  0x42   :  { %p5059_p2 = scmp.ne.s32.totalorder %s6309_s5, %s5058_s19  ;;  %p5062_p3 = scmp.lt.u32.totalorder %s5058_s19, %s6309_s5 }
  0x44   :  { %p5064_p4 = pnand %p5062_p3, %p5059_p2 }
  0x46   :  { %5067 = shalt.err (!%p5064_p4)
}
  0x47   :  { %s5068_s26 = scalar_lea.vmem %s103_s25, 16384  ;;  %p5073_p6 = scmp.lt.s32.totalorder %s103_s25, %s103_s25 }
  0x48   :  { %p5069_p5 = scmp.ne.s32.totalorder %s103_s25, %s5068_s26  ;;  %p5074_p7 = scmp.lt.s32.totalorder %s5068_s26, %s5068_s26 }
  0x4a   :  { %p5075_p8 = por %p5074_p7, %p5073_p6 }
  0x4c   :  { %p5076_p9 = pnand %p5075_p8, %p5069_p5 }
  0x4e   :  { %5079 = shalt.err (!%p5076_p9)
}
  0x4f   :  { %s5505_s23 = smov 256   ;;  %s5506_s27 = smov 16  }
  0x50   :  { %108 = dma.hbm_to_vmem [thread:$0]  %s6309_s5, 16384, %s103_s25, [#allocation12], %s5505_s23, %s5505_s23, %s5506_s27  }
  0x51   :  { %s5507_s22 = smov [#allocation14]   ;;  %s5508_s0 = smov [#allocation17]  }
  0x52   :  { %s126_s2 = sshll.u32 %s5507_s22, 4  ;;  %s150_s20 = sshll.u32 %s5508_s0, 4  ;;  %s127_s2 = int_to_ptr.vmem [resolvable:$true] %s126_s2  ;;  %s151_s20 = int_to_ptr.vmem [resolvable:$true] %s150_s20 }
  0x53   :  { %s5080_s21 = scalar_lea.hbm %s6311_s7, 128 }
  0x54   :  { %p5081_p10 = scmp.ne.s32.totalorder %s6311_s7, %s5080_s21  ;;  %p5084_p11 = scmp.lt.u32.totalorder %s5080_s21, %s6311_s7 }
  0x56   :  { %p5086_p12 = pnand %p5084_p11, %p5081_p10 }
  0x58   :  { %5089 = shalt.err (!%p5086_p12)
}
  0x59   :  { %s5090_s5 = scalar_lea.vmem %s127_s2, 128  ;;  %p5095_p0 = scmp.lt.s32.totalorder %s127_s2, %s127_s2 }
  0x5a   :  { %p5091_p13 = scmp.ne.s32.totalorder %s127_s2, %s5090_s5  ;;  %p5096_p1 = scmp.lt.s32.totalorder %s5090_s5, %s5090_s5 }
  0x5c   :  { %p5097_p2 = por %p5096_p1, %p5095_p0 }
  0x5e   :  { %p5098_p3 = pnand %p5097_p2, %p5091_p13 }
  0x60   :  { %5101 = shalt.err (!%p5098_p3)
}
  0x61   :  { %132 = dma.hbm_to_vmem [thread:$0]  %s6311_s7, 128, %s127_s2, [#allocation15], %s5501_s29, %s5501_s29, %s5502_s30  }
  0x62   :  { %s5102_s0 = scalar_lea.hbm %s6313_s9, 256 }
  0x63   :  { %p5103_p4 = scmp.ne.s32.totalorder %s6313_s9, %s5102_s0  ;;  %p5106_p5 = scmp.lt.u32.totalorder %s5102_s0, %s6313_s9 }
  0x65   :  { %p5108_p6 = pnand %p5106_p5, %p5103_p4 }
  0x67   :  { %5111 = shalt.err (!%p5108_p6)
}
  0x68   :  { %s5112_s24 = scalar_lea.vmem %s151_s20, 256  ;;  %p5117_p8 = scmp.lt.s32.totalorder %s151_s20, %s151_s20 }
  0x69   :  { %p5113_p7 = scmp.ne.s32.totalorder %s151_s20, %s5112_s24  ;;  %p5118_p9 = scmp.lt.s32.totalorder %s5112_s24, %s5112_s24 }
  0x6b   :  { %p5119_p10 = por %p5118_p9, %p5117_p8 }
  0x6d   :  { %p5120_p11 = pnand %p5119_p10, %p5113_p7 }
  0x6f   :  { %5123 = shalt.err (!%p5120_p11)
}
  0x70   :  { %s5509_s7 = smov 128   ;;  %s5510_s2 = smov 8  }
  0x71   :  { %156 = dma.hbm_to_vmem [thread:$0]  %s6313_s9, 256, %s151_s20, [#allocation18], %s5509_s7, %s5509_s7, %s5510_s2  }
  0x72   :  { %s5511_s5 = smov [#allocation20]   ;;  %s5512_s28 = smov [#allocation23]  }
  0x73   :  { %s175_s25 = sshll.u32 %s5511_s5, 4  ;;  %s197_s4 = sshll.u32 %s5512_s28, 4  ;;  %s176_s25 = int_to_ptr.vmem [resolvable:$true] %s175_s25  ;;  %s198_s4 = int_to_ptr.vmem [resolvable:$true] %s197_s4 }
  0x74   :  { %s5124_s18 = scalar_lea.hbm %s6315_s11, 16 }
  0x75   :  { %p5125_p12 = scmp.ne.s32.totalorder %s6315_s11, %s5124_s18  ;;  %p5128_p13 = scmp.lt.u32.totalorder %s5124_s18, %s6315_s11 }
  0x77   :  { %p5130_p0 = pnand %p5128_p13, %p5125_p12 }
  0x79   :  { %5133 = shalt.err (!%p5130_p0)
}
  0x7a   :  { %s5134_s9 = scalar_lea.vmem %s176_s25, 16  ;;  %s5138_s20 = scalar_lea.vmem %s176_s25, 32 }
  0x7b   :  { %p5135_p1 = scmp.ne.s32.totalorder %s176_s25, %s5134_s9  ;;  %p5139_p2 = scmp.lt.s32.totalorder %s176_s25, %s176_s25 }
  0x7c   :  { %p5140_p3 = scmp.lt.s32.totalorder %s5138_s20, %s5134_s9 }
  0x7e   :  { %p5141_p4 = por %p5140_p3, %p5139_p2 }
  0x80   :  { %p5142_p5 = pnand %p5141_p4, %p5135_p1 }
  0x82   :  { %5145 = shalt.err (!%p5142_p5)
}
  0x83   :  { %178 = dma.hbm_to_vmem [thread:$0]  %s6315_s11, 16, %s176_s25, [#allocation21]  }
  0x84   :  { %s5146_s22 = scalar_lea.hbm %s6317_s13, 256 }
  0x85   :  { %p5147_p6 = scmp.ne.s32.totalorder %s6317_s13, %s5146_s22  ;;  %p5150_p7 = scmp.lt.u32.totalorder %s5146_s22, %s6317_s13 }
  0x87   :  { %p5152_p8 = pnand %p5150_p7, %p5147_p6 }
  0x89   :  { %5155 = shalt.err (!%p5152_p8)
}
  0x8a   :  { %s5156_s1 = scalar_lea.vmem %s198_s4, 256  ;;  %p5161_p10 = scmp.lt.s32.totalorder %s198_s4, %s198_s4 }
  0x8b   :  { %p5157_p9 = scmp.ne.s32.totalorder %s198_s4, %s5156_s1  ;;  %p5162_p11 = scmp.lt.s32.totalorder %s5156_s1, %s5156_s1 }
  0x8d   :  { %p5163_p12 = por %p5162_p11, %p5161_p10 }
  0x8f   :  { %p5164_p13 = pnand %p5163_p12, %p5157_p9 }
  0x91   :  { %5167 = shalt.err (!%p5164_p13)
}
  0x92   :  { %200 = dma.hbm_to_vmem [thread:$0]  %s6317_s13, 256, %s198_s4, [#allocation24]  }
  0x93   :  { %s5513_s24 = smov [#allocation26]   ;;  %s5514_s20 = smov [#allocation29]  }
  0x94   :  { %s217_s9 = sshll.u32 %s5513_s24, 4  ;;  %s237_s3 = sshll.u32 %s5514_s20, 4  ;;  %s218_s9 = int_to_ptr.vmem [resolvable:$true] %s217_s9  ;;  %s238_s3 = int_to_ptr.vmem [resolvable:$true] %s237_s3 }
  0x95   :  { %s5168_s28 = scalar_lea.hbm %s6319_s15, 16 }
  0x96   :  { %p5169_p0 = scmp.ne.s32.totalorder %s6319_s15, %s5168_s28  ;;  %p5172_p1 = scmp.lt.u32.totalorder %s5168_s28, %s6319_s15 }
  0x98   :  { %p5174_p2 = pnand %p5172_p1, %p5169_p0 }
  0x9a   :  { %5177 = shalt.err (!%p5174_p2)
}
  0x9b   :  { %s5178_s13 = scalar_lea.vmem %s218_s9, 16  ;;  %s5182_s4 = scalar_lea.vmem %s218_s9, 32 }
  0x9c   :  { %p5179_p3 = scmp.ne.s32.totalorder %s218_s9, %s5178_s13  ;;  %p5183_p4 = scmp.lt.s32.totalorder %s218_s9, %s218_s9 }
  0x9d   :  { %p5184_p5 = scmp.lt.s32.totalorder %s5182_s4, %s5178_s13 }
  0x9f   :  { %p5185_p6 = por %p5184_p5, %p5183_p4 }
  0xa1   :  { %p5186_p7 = pnand %p5185_p6, %p5179_p3 }
  0xa3   :  { %5189 = shalt.err (!%p5186_p7)
}
  0xa4   :  { %220 = dma.hbm_to_vmem [thread:$0]  %s6319_s15, 16, %s218_s9, [#allocation27]  }
  0xa5   :  { %s5190_s24 = scalar_lea.hbm %s6321_s17, 16 }
  0xa6   :  { %p5191_p8 = scmp.ne.s32.totalorder %s6321_s17, %s5190_s24  ;;  %p5194_p9 = scmp.lt.u32.totalorder %s5190_s24, %s6321_s17 }
  0xa8   :  { %p5196_p10 = pnand %p5194_p9, %p5191_p8 }
  0xaa   :  { %5199 = shalt.err (!%p5196_p10)
}
  0xab   :  { %s5200_s22 = scalar_lea.vmem %s238_s3, 16  ;;  %s5204_s0 = scalar_lea.vmem %s238_s3, 32 }
  0xac   :  { %p5201_p11 = scmp.ne.s32.totalorder %s238_s3, %s5200_s22  ;;  %p5205_p12 = scmp.lt.s32.totalorder %s238_s3, %s238_s3 }
  0xad   :  { %p5206_p13 = scmp.lt.s32.totalorder %s5204_s0, %s5200_s22 }
  0xaf   :  { %p5207_p0 = por %p5206_p13, %p5205_p12 }
  0xb1   :  { %p5208_p1 = pnand %p5207_p0, %p5201_p11 }
  0xb3   :  { %5211 = shalt.err (!%p5208_p1)
}
  0xb4   :  { %240 = dma.hbm_to_vmem [thread:$0]  %s6321_s17, 16, %s238_s3, [#allocation30]  }
  0xb5   :  { %s5515_s18 = smov [#allocation2]   ;;  %s6343_s21 = sld [smem:[#allocation47_spill]] }
  0xb6   :  { %s42_s19 = sshll.u32 %s5515_s18, 4  ;;  %s43_s19 = int_to_ptr.vmem [resolvable:$true] %s42_s19 }
  0xbb   :  { %s5212_s1 = scalar_lea.hbm %s6343_s21, 1024 }
  0xbc   :  { %p5213_p2 = scmp.ne.s32.totalorder %s6343_s21, %s5212_s1  ;;  %p5216_p3 = scmp.lt.u32.totalorder %s5212_s1, %s6343_s21 }
  0xbe   :  { %p5218_p4 = pnand %p5216_p3, %p5213_p2 }
  0xc0   :  { %5221 = shalt.err (!%p5218_p4)
}
  0xc1   :  { %s5222_s26 = scalar_lea.vmem %s43_s19, 1024  ;;  %p5227_p6 = scmp.lt.s32.totalorder %s43_s19, %s43_s19 }
  0xc2   :  { %p5223_p5 = scmp.ne.s32.totalorder %s43_s19, %s5222_s26  ;;  %p5228_p7 = scmp.lt.s32.totalorder %s5222_s26, %s5222_s26 }
  0xc4   :  { %p5229_p8 = por %p5228_p7, %p5227_p6 }
  0xc6   :  { %p5230_p9 = pnand %p5229_p8, %p5223_p5 }
  0xc8   :  { %5233 = shalt.err (!%p5230_p9)
}
  0xc9   :  { %s5516_s17 = smov 512   ;;  %s5517_s3 = smov 32  }
  0xca   :  { %48 = dma.hbm_to_vmem [thread:$0]  %s6343_s21, 1024, %s43_s19, [#allocation3], %s5516_s17, %s5516_s17, %s5517_s3  }
  0xcb   :  { %s5518_s22 = smov [#allocation7]   ;;  %s5519_s15 = smov [#allocation10]  }
  0xcc   :  { %s66_s0 = sshll.u32 %s5518_s22, 4  ;;  %s90_s9 = sshll.u32 %s5519_s15, 4  ;;  %s67_s0 = int_to_ptr.vmem [resolvable:$true] %s66_s0  ;;  %s5775_s9 = int_to_ptr.vmem [resolvable:$true] %s90_s9 }
  0xcd   :  { %s6344_s4 = sld [smem:[#allocation49_spill]] }
  0xd3   :  { %s5234_s1 = scalar_lea.hbm %s6344_s4, 1024 }
  0xd4   :  { %p5235_p10 = scmp.ne.s32.totalorder %s6344_s4, %s5234_s1  ;;  %p5238_p11 = scmp.lt.u32.totalorder %s5234_s1, %s6344_s4 }
  0xd6   :  { %p5240_p12 = pnand %p5238_p11, %p5235_p10 }
  0xd8   :  { %5243 = shalt.err (!%p5240_p12)
}
  0xd9   :  { %s5244_s19 = scalar_lea.vmem %s67_s0, 1024  ;;  %p5249_p0 = scmp.lt.s32.totalorder %s67_s0, %s67_s0 }
  0xda   :  { %p5245_p13 = scmp.ne.s32.totalorder %s67_s0, %s5244_s19  ;;  %p5250_p1 = scmp.lt.s32.totalorder %s5244_s19, %s5244_s19 }
  0xdc   :  { %p5251_p2 = por %p5250_p1, %p5249_p0 }
  0xde   :  { %p5252_p3 = pnand %p5251_p2, %p5245_p13 }
  0xe0   :  { %5255 = shalt.err (!%p5252_p3)
}
  0xe1   :  { %72 = dma.hbm_to_vmem [thread:$0]  %s6344_s4, 1024, %s67_s0, [#allocation6], %s5501_s29, %s5501_s29, %s5502_s30  }
  0xe2   :  { %s6345_s22 = sld [smem:[#allocation51_spill]] }
  0xe8   :  { %s5256_s15 = scalar_lea.hbm %s6345_s22, 1024 }
  0xe9   :  { %p5257_p4 = scmp.ne.s32.totalorder %s6345_s22, %s5256_s15  ;;  %p5260_p5 = scmp.lt.u32.totalorder %s5256_s15, %s6345_s22 }
  0xeb   :  { %p5262_p6 = pnand %p5260_p5, %p5257_p4 }
  0xed   :  { %5265 = shalt.err (!%p5262_p6)
}
  0xee   :  { %s5266_s25 = scalar_lea.vmem %s5775_s9, 1024  ;;  %p5271_p8 = scmp.lt.s32.totalorder %s5775_s9, %s5775_s9 }
  0xef   :  { %p5267_p7 = scmp.ne.s32.totalorder %s5775_s9, %s5266_s25  ;;  %p5272_p9 = scmp.lt.s32.totalorder %s5266_s25, %s5266_s25 }
  0xf1   :  { %p5273_p10 = por %p5272_p9, %p5271_p8 }
  0xf3   :  { %p5274_p11 = pnand %p5273_p10, %p5267_p7 }
  0xf5   :  { %5277 = shalt.err (!%p5274_p11)
}
  0xf6   :  { %96 = dma.hbm_to_vmem [thread:$0]  %s6345_s22, 1024, %s5775_s9, [#allocation9], %s5501_s29, %s5501_s29, %s5502_s30  }
  0xf7   :  { %s5520_s24 = smov [#allocation13]   ;;  %s5521_s19 = smov [#allocation16]  }
  0xf8   :  { %s114_s20 = sshll.u32 %s5520_s24, 4  ;;  %s138_s21 = sshll.u32 %s5521_s19, 4  ;;  %s115_s20 = int_to_ptr.vmem [resolvable:$true] %s114_s20  ;;  %s5812_s21 = int_to_ptr.vmem [resolvable:$true] %s138_s21 }
  0xf9   :  { %s5278_s28 = scalar_lea.hbm %s6310_s6, 4096 }
  0xfa   :  { %p5279_p12 = scmp.ne.s32.totalorder %s6310_s6, %s5278_s28  ;;  %p5282_p13 = scmp.lt.u32.totalorder %s5278_s28, %s6310_s6 }
  0xfc   :  { %p5284_p0 = pnand %p5282_p13, %p5279_p12 }
  0xfe   :  { %5287 = shalt.err (!%p5284_p0)
}
  0xff   :  { %s5288_s9 = scalar_lea.vmem %s115_s20, 4096  ;;  %p5293_p2 = scmp.lt.s32.totalorder %s115_s20, %s115_s20 }
 0x100   :  { %p5289_p1 = scmp.ne.s32.totalorder %s115_s20, %s5288_s9  ;;  %p5294_p3 = scmp.lt.s32.totalorder %s5288_s9, %s5288_s9 }
 0x102   :  { %p5295_p4 = por %p5294_p3, %p5293_p2 }
 0x104   :  { %p5296_p5 = pnand %p5295_p4, %p5289_p1 }
 0x106   :  { %5299 = shalt.err (!%p5296_p5)
}
 0x107   :  { %120 = dma.hbm_to_vmem [thread:$0]  %s6310_s6, 4096, %s115_s20, [#allocation12], %s5505_s23, %s5505_s23, %s5506_s27  }
 0x108   :  { %s5300_s4 = scalar_lea.hbm %s6312_s8, 128 }
 0x109   :  { %p5301_p6 = scmp.ne.s32.totalorder %s6312_s8, %s5300_s4  ;;  %p5304_p7 = scmp.lt.u32.totalorder %s5300_s4, %s6312_s8 }
 0x10b   :  { %p5306_p8 = pnand %p5304_p7, %p5301_p6 }
 0x10d   :  { %5309 = shalt.err (!%p5306_p8)
}
 0x10e   :  { %s5310_s28 = scalar_lea.vmem %s5812_s21, 128  ;;  %p5315_p10 = scmp.lt.s32.totalorder %s5812_s21, %s5812_s21 }
 0x10f   :  { %p5311_p9 = scmp.ne.s32.totalorder %s5812_s21, %s5310_s28  ;;  %p5316_p11 = scmp.lt.s32.totalorder %s5310_s28, %s5310_s28 }
 0x111   :  { %p5317_p12 = por %p5316_p11, %p5315_p10 }
 0x113   :  { %p5318_p13 = pnand %p5317_p12, %p5311_p9 }
 0x115   :  { %5321 = shalt.err (!%p5318_p13)
}
 0x116   :  { %144 = dma.hbm_to_vmem [thread:$0]  %s6312_s8, 128, %s5812_s21, [#allocation15], %s5501_s29, %s5501_s29, %s5502_s30  }
 0x117   :  { %s5522_s27 = smov [#allocation19]   ;;  %s5523_s15 = smov [#allocation22]  }
 0x118   :  { %s162_s20 = sshll.u32 %s5522_s27, 4  ;;  %s184_s18 = sshll.u32 %s5523_s15, 4  ;;  %s163_s20 = int_to_ptr.vmem [resolvable:$true] %s162_s20  ;;  %s5849_s18 = int_to_ptr.vmem [resolvable:$true] %s184_s18 }
 0x119   :  { %s5322_s9 = scalar_lea.hbm %s6314_s10, 2048 }
 0x11a   :  { %p5323_p0 = scmp.ne.s32.totalorder %s6314_s10, %s5322_s9  ;;  %p5326_p1 = scmp.lt.u32.totalorder %s5322_s9, %s6314_s10 }
 0x11c   :  { %p5328_p2 = pnand %p5326_p1, %p5323_p0 }
 0x11e   :  { %5331 = shalt.err (!%p5328_p2)
}
 0x11f   :  { %s5332_s8 = scalar_lea.vmem %s163_s20, 2048  ;;  %p5337_p4 = scmp.lt.s32.totalorder %s163_s20, %s163_s20 }
 0x120   :  { %p5333_p3 = scmp.ne.s32.totalorder %s163_s20, %s5332_s8  ;;  %p5338_p5 = scmp.lt.s32.totalorder %s5332_s8, %s5332_s8 }
 0x122   :  { %p5339_p6 = por %p5338_p5, %p5337_p4 }
 0x124   :  { %p5340_p7 = pnand %p5339_p6, %p5333_p3 }
 0x126   :  { %5343 = shalt.err (!%p5340_p7)
}
 0x127   :  { %168 = dma.hbm_to_vmem [thread:$0]  %s6314_s10, 2048, %s163_s20, [#allocation18], %s5509_s7, %s5509_s7, %s5510_s2  }
 0x128   :  { %s5344_s24 = scalar_lea.hbm %s6316_s12, 8192 }
 0x129   :  { %p5345_p8 = scmp.ne.s32.totalorder %s6316_s12, %s5344_s24  ;;  %p5348_p9 = scmp.lt.u32.totalorder %s5344_s24, %s6316_s12 }
 0x12b   :  { %p5350_p10 = pnand %p5348_p9, %p5345_p8 }
 0x12d   :  { %5353 = shalt.err (!%p5350_p10)
}
 0x12e   :  { %s5354_s6 = scalar_lea.vmem %s5849_s18, 8192  ;;  %p5359_p12 = scmp.lt.s32.totalorder %s5849_s18, %s5849_s18 }
 0x12f   :  { %p5355_p11 = scmp.ne.s32.totalorder %s5849_s18, %s5354_s6  ;;  %p5360_p13 = scmp.lt.s32.totalorder %s5354_s6, %s5354_s6 }
 0x131   :  { %p5361_p0 = por %p5360_p13, %p5359_p12 }
 0x133   :  { %p5362_p1 = pnand %p5361_p0, %p5355_p11 }
 0x135   :  { %5365 = shalt.err (!%p5362_p1)
}
 0x136   :  { %190 = dma.hbm_to_vmem [thread:$0]  %s6316_s12, 8192, %s5849_s18, [#allocation21], %s5509_s7, %s5509_s7, %s5510_s2  }
 0x137   :  { %s5524_s27 = smov [#allocation25]   ;;  %s5525_s15 = smov [#allocation28]  }
 0x138   :  { %s207_s20 = sshll.u32 %s5524_s27, 4  ;;  %s227_s13 = sshll.u32 %s5525_s15, 4  ;;  %s208_s20 = int_to_ptr.vmem [resolvable:$true] %s207_s20  ;;  %s228_s13 = int_to_ptr.vmem [resolvable:$true] %s227_s13 }
 0x139   :  { %s5366_s22 = scalar_lea.hbm %s6318_s14, 16 }
 0x13a   :  { %p5367_p2 = scmp.ne.s32.totalorder %s6318_s14, %s5366_s22  ;;  %p5370_p3 = scmp.lt.u32.totalorder %s5366_s22, %s6318_s14 }
 0x13c   :  { %p5372_p4 = pnand %p5370_p3, %p5367_p2 }
 0x13e   :  { %5375 = shalt.err (!%p5372_p4)
}
 0x13f   :  { %s5376_s12 = scalar_lea.vmem %s208_s20, 16  ;;  %s5380_s7 = scalar_lea.vmem %s208_s20, 32 }
 0x140   :  { %p5377_p5 = scmp.ne.s32.totalorder %s208_s20, %s5376_s12  ;;  %p5381_p6 = scmp.lt.s32.totalorder %s208_s20, %s208_s20 }
 0x141   :  { %p5382_p7 = scmp.lt.s32.totalorder %s5380_s7, %s5376_s12 }
 0x143   :  { %p5383_p8 = por %p5382_p7, %p5381_p6 }
 0x145   :  { %p5384_p9 = pnand %p5383_p8, %p5377_p5 }
 0x147   :  { %5387 = shalt.err (!%p5384_p9)
}
 0x148   :  { %210 = dma.hbm_to_vmem [thread:$0]  %s6318_s14, 16, %s208_s20, [#allocation24]  }
 0x149   :  { %s5388_s21 = scalar_lea.hbm %s6320_s16, 16 }
 0x14a   :  { %p5389_p10 = scmp.ne.s32.totalorder %s6320_s16, %s5388_s21  ;;  %p5392_p11 = scmp.lt.u32.totalorder %s5388_s21, %s6320_s16 }
 0x14c   :  { %p5394_p12 = pnand %p5392_p11, %p5389_p10 }
 0x14e   :  { %5397 = shalt.err (!%p5394_p12)
}
 0x14f   :  { %s5398_s5 = scalar_lea.vmem %s228_s13, 16  ;;  %s5402_s28 = scalar_lea.vmem %s228_s13, 32 }
 0x150   :  { %p5399_p13 = scmp.ne.s32.totalorder %s228_s13, %s5398_s5  ;;  %p5403_p0 = scmp.lt.s32.totalorder %s228_s13, %s228_s13 }
 0x151   :  { %p5404_p1 = scmp.lt.s32.totalorder %s5402_s28, %s5398_s5 }
 0x153   :  { %p5405_p2 = por %p5404_p1, %p5403_p0 }
 0x155   :  { %p5406_p3 = pnand %p5405_p2, %p5399_p13 }
 0x157   :  { %5409 = shalt.err (!%p5406_p3)
}
 0x158   :  { %230 = dma.hbm_to_vmem [thread:$0]  %s6320_s16, 16, %s228_s13, [#allocation27]  }
 0x159   :  { %s5526_s10 = smov [#allocation31]   ;;  %s5527_s27 = smov [#allocation32]  }
 0x15a   :  { %s247_s23 = sshll.u32 %s5526_s10, 4  ;;  %s257_s20 = sshll.u32 %s5527_s27, 4  ;;  %s248_s23 = int_to_ptr.vmem [resolvable:$true] %s247_s23  ;;  %s258_s20 = int_to_ptr.vmem [resolvable:$true] %s257_s20 }
 0x15b   :  { %s6346_s9 = sld [smem:[#allocation52_spill]] }
 0x161   :  { %s5410_s22 = scalar_lea.hbm %s6346_s9, 64 }
 0x162   :  { %p5411_p4 = scmp.ne.s32.totalorder %s6346_s9, %s5410_s22  ;;  %p5414_p5 = scmp.lt.u32.totalorder %s5410_s22, %s6346_s9 }
 0x164   :  { %p5416_p6 = pnand %p5414_p5, %p5411_p4 }
 0x166   :  { %5419 = shalt.err (!%p5416_p6)
}
 0x167   :  { %s5420_s16 = scalar_lea.vmem %s248_s23, 64  ;;  %p5425_p8 = scmp.lt.s32.totalorder %s248_s23, %s248_s23 }
 0x168   :  { %p5421_p7 = scmp.ne.s32.totalorder %s248_s23, %s5420_s16  ;;  %p5426_p9 = scmp.lt.s32.totalorder %s5420_s16, %s5420_s16 }
 0x16a   :  { %p5427_p10 = por %p5426_p9, %p5425_p8 }
 0x16c   :  { %p5428_p11 = pnand %p5427_p10, %p5421_p7 }
 0x16e   :  { %5431 = shalt.err (!%p5428_p11)
}
 0x16f   :  { %250 = dma.hbm_to_vmem [thread:$0]  %s6346_s9, 64, %s248_s23, [#allocation30]  }
 0x170   :  { %s6347_s18 = sld [smem:[#allocation53_spill]] }
 0x176   :  { %s5432_s29 = scalar_lea.hbm %s6347_s18, 64 }
 0x177   :  { %p5433_p12 = scmp.ne.s32.totalorder %s6347_s18, %s5432_s29  ;;  %p5436_p13 = scmp.lt.u32.totalorder %s5432_s29, %s6347_s18 }
 0x179   :  { %p5438_p0 = pnand %p5436_p13, %p5433_p12 }
 0x17b   :  { %5441 = shalt.err (!%p5438_p0)
}
 0x17c   :  { %s5442_s19 = scalar_lea.vmem %s258_s20, 64  ;;  %p5447_p2 = scmp.lt.s32.totalorder %s258_s20, %s258_s20 }
 0x17d   :  { %p5443_p1 = scmp.ne.s32.totalorder %s258_s20, %s5442_s19  ;;  %p5448_p3 = scmp.lt.s32.totalorder %s5442_s19, %s5442_s19 }
 0x17f   :  { %p5449_p4 = por %p5448_p3, %p5447_p2 }
 0x181   :  { %p5450_p5 = pnand %p5449_p4, %p5443_p1 }
 0x183   :  { %5453 = shalt.err (!%p5450_p5)
}
 0x184   :  { %260 = dma.hbm_to_vmem [thread:$0]  %s6347_s18, 64, %s258_s20, [#allocation33]  }
 0x185   :  { %5476 = dma.done.wait [#allocation3], 1024  }
 0x186   :  { %5477 = vsyncadd [#allocation3], 4294966272 }
 0x187   :  { %5478 = dma.done.wait [#allocation6], 5120  }
 0x188   :  { %5479 = vsyncadd [#allocation6], 4294962176 }
 0x189   :  { %5480 = dma.done.wait [#allocation9], 2048  }
 0x18a   :  { %5481 = vsyncadd [#allocation9], 4294965248 }
 0x18b   :  { %5482 = dma.done.wait [#allocation12], 20480  }
 0x18c   :  { %5483 = vsyncadd [#allocation12], 4294946816 }
 0x18d   :  { %5484 = dma.done.wait [#allocation15], 256  }
 0x18e   :  { %5485 = vsyncadd [#allocation15], 4294967040 }
 0x18f   :  { %5486 = dma.done.wait [#allocation18], 2304  }
 0x190   :  { %5487 = vsyncadd [#allocation18], 4294964992 }
 0x191   :  { %5488 = dma.done.wait [#allocation21], 8208  }
 0x192   :  { %5489 = vsyncadd [#allocation21], 4294959088 }
 0x193   :  { %5490 = dma.done.wait [#allocation24], 272  }
 0x194   :  { %5491 = vsyncadd [#allocation24], 4294967024 }
 0x195   :  { %5492 = dma.done.wait [#allocation27], 32  }
 0x196   :  { %5493 = vsyncadd [#allocation27], 4294967264 }
 0x197   :  { %5494 = dma.done.wait [#allocation30], 80  }
 0x198   :  { %5495 = vsyncadd [#allocation30], 4294967216 }
 0x199   :  { %5496 = dma.done.wait [#allocation33], 64  }
 0x19a   :  { %5497 = vsyncadd [#allocation33], 4294967232  ;;  %v4688_v0 = vld [vmem:[#allocation5 + $0x40] sm:$0xff]   ;;  %v4690_v2 = vld [vmem:[#allocation5 + $0x48] sm:$0xff]   ;;  %vm674_vm0 = vcmask 130048   ;;  %vm5529_vm1 = vmmov 0  }
 0x19b   :  { %v4689_v1 = vld [vmem:[#allocation5] sm:$0xff]   ;;  %4129 = vmatprep.subr.bf16.mxu0 %v4688_v0  ;;  %v4691_v3 = vld [vmem:[#allocation5 + $0x8] sm:$0xff]   ;;  %v4692_v4 = vld [vmem:[#allocation5 + $0x50] sm:$0xff]   ;;  %vm3087_vm2 = vcmask 1043456   ;;  %vm3080_vm3 = vcmask 31744   ;;  %s5531_s28 = smov [#allocation34]  }
 0x19c   :  { %4130 = vmatpush3.bf16.msra.mxu0 %v4689_v1  ;;  %v4693_v5 = vld [vmem:[#allocation5 + $0x10] sm:$0xff]   ;;  %v4694_v6 = vld [vmem:[#allocation5 + $0x58] sm:$0xff]   ;;  %v4696_v8 = vld [vmem:[#allocation5 + $0x60] sm:$0xff]   ;;  %s3851_s14 = sshll.u32 %s5531_s28, 4  ;;  %s3852_s14 = int_to_ptr.vmem [resolvable:$true] %s3851_s14 }
 0x19d   :  { %4131 = vmatprep.subr.bf16.mxu0 %v4690_v2  ;;  %v4695_v7 = vld [vmem:[#allocation5 + $0x18] sm:$0xff]   ;;  %v4697_v9 = vld [vmem:[#allocation5 + $0x20] sm:$0xff]   ;;  %v4698_v10 = vld [vmem:[#allocation5 + $0x68] sm:$0xff]   ;;  %s5454_s6 = scalar_lea.vmem %s3852_s14, 1024  ;;  %p5459_p7 = scmp.lt.s32.totalorder %s3852_s14, %s3852_s14 }
 0x19e   :  { %v323_v11 = vld [vmem:[#allocation2 + $0x8] sm:$0xff]  ;;  %v4700_v15 = vld [vmem:[#allocation5 + $0x70] sm:$0xff]   ;;  %v4702_v17 = vld [vmem:[#allocation5 + $0x78] sm:$0xff]   ;;  %p5455_p6 = scmp.ne.s32.totalorder %s3852_s14, %s5454_s6  ;;  %p5460_p8 = scmp.lt.s32.totalorder %s5454_s6, %s5454_s6 }
 0x19f   :  { %v327_v12 = vld [vmem:[#allocation2 + $0x28] sm:$0xff]  ;;  %v4701_v16 = vld [vmem:[#allocation5 + $0x30] sm:$0xff]   ;;  %v4703_v18 = vld [vmem:[#allocation5 + $0x38] sm:$0xff]  }
 0x1a0   :  { %4132 = vmatpush3.bf16.msra.mxu0 %v4691_v3  ;;  %v5934_v13 = vpack.c.bf16 %v327_v12, %v323_v11  ;;  %v4699_v14 = vld [vmem:[#allocation5 + $0x28] sm:$0xff]   ;;  %v322_v19 = vld [vmem:[#allocation2] sm:$0xff]  ;;  %v325_v25 = vld [vmem:[#allocation2 + $0x18] sm:$0xff]  ;;  %p5461_p9 = por %p5460_p8, %p5459_p7 }
 0x1a1   :  { %4133 = vmatprep.subr.bf16.mxu0 %v4692_v4  ;;  %v326_v20 = vld [vmem:[#allocation2 + $0x20] sm:$0xff]  ;;  %v4706_v24 = vld [vmem:[#allocation5 + $0xc8] sm:$0xff]   ;;  %v329_v26 = vld [vmem:[#allocation2 + $0x38] sm:$0xff] }
 0x1a2   :  { %622 = vmatprep.mubr.bf16.mxu0 %v5934_v13  ;;  %v4704_v21 = vld [vmem:[#allocation5 + $0xc0] sm:$0xff]   ;;  %v5937_v22 = vpack.c.bf16 %v326_v20, %v322_v19  ;;  %v4707_v27 = vld [vmem:[#allocation5 + $0x88] sm:$0xff]   ;;  %v4708_v28 = vld [vmem:[#allocation5 + $0xd0] sm:$0xff]   ;;  %v5940_v29 = vpack.c.bf16 %v329_v26, %v325_v25  ;;  %p5462_p10 = pnand %p5461_p9, %p5455_p6 }
 0x1a3   :  { %v4705_v23 = vld [vmem:[#allocation5 + $0x80] sm:$0xff]   ;;  %v4709_v30 = vld [vmem:[#allocation5 + $0x90] sm:$0xff]   ;;  %v4710_v31 = vld [vmem:[#allocation5 + $0xd8] sm:$0xff]  }
 0x1a4   :  { %4134 = vmatpush3.bf16.msra.mxu0 %v4693_v5  ;;  %v4711_v32 = vld [vmem:[#allocation5 + $0x98] sm:$0xff]   ;;  %v4712_v33 = vld [vmem:[#allocation5 + $0xe0] sm:$0xff]   ;;  %v4714_v35 = vld [vmem:[#allocation5 + $0xe8] sm:$0xff]  }
 0x1a5   :  { %4135 = vmatprep.subr.bf16.mxu0 %v4694_v6  ;;  %v4713_v34 = vld [vmem:[#allocation5 + $0xa0] sm:$0xff]   ;;  %v4715_v36 = vld [vmem:[#allocation5 + $0xa8] sm:$0xff]   ;;  %v4716_v37 = vld [vmem:[#allocation5 + $0xf0] sm:$0xff]  }
 0x1a6   :  { %v4717_v38 = vld [vmem:[#allocation5 + $0xb0] sm:$0xff]   ;;  %v4718_v39 = vld [vmem:[#allocation5 + $0xf8] sm:$0xff]  }
 0x1a7   :  { %v4719_v40 = vld [vmem:[#allocation5 + $0xb8] sm:$0xff]   ;;  %v324_v41 = vld [vmem:[#allocation2 + $0x10] sm:$0xff] }
 0x1a8   :  { %4136 = vmatpush3.bf16.msra.mxu0 %v4695_v7  ;;  %v328_v42 = vld [vmem:[#allocation2 + $0x30] sm:$0xff]  ;;  %v5950_v60 = vld [vmem:[#allocation17 + $0x8] sm:$0xff] }
 0x1a9   :  { %4137 = vmatprep.subr.bf16.mxu0 %v4696_v8  ;;  %v5943_v43 = vpack.c.bf16 %v328_v42, %v324_v41  ;;  %v5946_v44 = vld [vmem:[#allocation17] sm:$0xff]  ;;  %v4729_v42 = vld [vmem:[#allocation10 + $0x38] sm:$0xff]  }
 0x1aa   :  { %4376 = vmatprep.mubr.msk.f32.mxu1 %vm674_vm0, %v5946_v44  ;;  %v3909_v19 = vld [vmem:[#allocation25] ss:$0 sm:$0xff] }
 0x1ab   :  { %v4728_v41 = vld [vmem:[#allocation10 + $0x30] sm:$0xff]  }
 0x1ac   :  { %4138 = vmatpush3.bf16.msra.mxu0 %v4697_v9 }
 0x1ad   :  { %4139 = vmatprep.subr.bf16.mxu0 %v4698_v10  ;;  %v5528_v10 = vmov 0.0  }
 0x1b0   :  { %4140 = vmatpush3.bf16.msra.mxu0 %v4699_v14 }
 0x1b1   :  { %4141 = vmatprep.subr.bf16.mxu0 %v4700_v15 }
 0x1b4   :  { %4142 = vmatpush3.bf16.msra.mxu0 %v4701_v16 }
 0x1b5   :  { %4143 = vmatprep.subr.bf16.mxu0 %v4702_v17 }
 0x1b8   :  { %4144 = vmatpush3.bf16.msra.mxu0 %v4703_v18 }
 0x1b9   :  { %4151 = vmatprep.subr.bf16.mxu0 %v4704_v21 }
 0x1bb   :  { %623 = vmatmul.mubr.bf16.vlgmr.msra.gmra.mrb[0].mxu0 %v5937_v22 }
 0x1bc   :  { %4152 = vmatpush3.bf16.msra.mxu0 %v4705_v23  ;;  %663 = vmatprep.mubr.bf16.mxu0 %v5940_v29 }
 0x1bd   :  { %4153 = vmatprep.subr.bf16.mxu0 %v4706_v24  ;;  %v3910_v24 = vld [vmem:[#allocation26] ss:$0 sm:$0xff] }
 0x1c0   :  { %4154 = vmatpush3.bf16.msra.mxu0 %v4707_v27 }
 0x1c1   :  { %4155 = vmatprep.subr.bf16.mxu0 %v4708_v28 }
 0x1c4   :  { %4156 = vmatpush3.bf16.msra.mxu0 %v4709_v30 }
 0x1c5   :  { %4157 = vmatprep.subr.bf16.mxu0 %v4710_v31 }
 0x1c8   :  { %4158 = vmatpush3.bf16.msra.mxu0 %v4711_v32 }
 0x1c9   :  { %4159 = vmatprep.subr.bf16.mxu0 %v4712_v33  ;;  %v4720_v33 = vld [vmem:[#allocation14] sm:$0xff]  }
 0x1cc   :  { %4160 = vmatpush3.bf16.msra.mxu0 %v4713_v34  ;;  %v4721_v34 = vld [vmem:[#allocation16] sm:$0xff]  }
 0x1cd   :  { %4161 = vmatprep.subr.bf16.mxu0 %v4714_v35  ;;  %v4722_v35 = vld [vmem:[#allocation10] sm:$0xff]  }
 0x1d0   :  { %4162 = vmatpush3.bf16.msra.mxu0 %v4715_v36  ;;  %v4723_v36 = vld [vmem:[#allocation10 + $0x8] sm:$0xff]  }
 0x1d1   :  { %4163 = vmatprep.subr.bf16.mxu0 %v4716_v37  ;;  %v4724_v37 = vld [vmem:[#allocation10 + $0x10] sm:$0xff]  }
 0x1d4   :  { %4164 = vmatpush3.bf16.msra.mxu0 %v4717_v38  ;;  %v4725_v38 = vld [vmem:[#allocation10 + $0x18] sm:$0xff]  }
 0x1d5   :  { %4165 = vmatprep.subr.bf16.mxu0 %v4718_v39  ;;  %v4726_v39 = vld [vmem:[#allocation10 + $0x20] sm:$0xff]  }
 0x1d8   :  { %4166 = vmatpush3.bf16.msra.mxu0 %v4719_v40  ;;  %v4727_v40 = vld [vmem:[#allocation10 + $0x28] sm:$0xff]  }
 0x1d9   :  { %4386 = vmatprep.subr.bf16.mxu0 %v5528_v10 }
 0x1db   :  { %664 = vmatmul.mubr.bf16.vlgmr.msra.gmra.mrb[4].mxu0 %v5943_v43 }
 0x1dc   :  { %4388 = vmatprep.mubr.msk.bf16.mxu0 %vm5529_vm1, %v5528_v10 }
 0x28e   :  { %v4145_v45 = vpop.f32.mrb[0].mxu0 }
 0x28f   :  { %v4146_v46 = vpop.f32.mrb[1].mxu0 }
 0x290   :  { %v4147_v47 = vadd.f32 %v4146_v46, %v4145_v45  ;;  %v4148_v48 = vpop.f32.mrb[2].mxu0 }
 0x291   :  { %v4149_v49 = vpop.f32.mrb[3].mxu0 }
 0x292   :  { %v4150_v50 = vadd.f32 %v4149_v49, %v4148_v48 }
 0x2ae   :  { %v4167_v51 = vpop.f32.mrb[4].mxu0 }
 0x2af   :  { %v4168_v52 = vpop.f32.mrb[5].mxu0 }
 0x2b0   :  { %v4169_v53 = vadd.f32 %v4168_v52, %v4167_v51  ;;  %v4170_v54 = vpop.f32.mrb[6].mxu0 }
 0x2b1   :  { %v4171_v55 = vpop.f32.mrb[7].mxu0 }
 0x2b2   :  { %v666_v56 = vadd.f32 %v4169_v53, %v4147_v47  ;;  %v4172_v57 = vadd.f32 %v4171_v55, %v4170_v54 }
 0x2b4   :  { %v669_v58 = vadd.f32 %v4172_v57, %v4150_v50  ;;  %v4730_v50 = vld [vmem:[#allocation8] sm:$0xff]   ;;  %v4732_v57 = vld [vmem:[#allocation8 + $0x10] sm:$0xff]  }
 0x2b6   :  { %v4472_v59 = vpack.c.bf16 %v669_v58, %v666_v56 }
 0x2b8   :  { %4473 = vmatprep.subr.bf16.mxu1 %v4472_v59 }
 0x2b9   :  { %4475 = vmatpush3.bf16.msra.mxu1 %v4472_v59  ;;  %v4734_v59 = vld [vmem:[#allocation8 + $0x20] sm:$0xff]  }
 0x2bc   :  { %4377 = vmatmul.mubr.msk.f32.vlgmr.msra.gmra.mrb[0].mxu1 %vm674_vm0, %v5950_v60 }
 0x2bd   :  { %4383 = vmatprep.mubr.msk.f32.mxu1 %vm674_vm0, %v5946_v44 }
 0x38f   :  { %v4378_v61 = vpop.f32.mrb[0].mxu1 }
 0x390   :  { %v747_v62 = vpop.f32.mrb[1].mxu1 }
 0x391   :  { %756 = vadd.xlane.f32.xlu0 %v747_v62  ;;  %v4736_v62 = vld [vmem:[#allocation8 + $0x30] sm:$0xff]  }
 0x395   :  { %758 = vadd.xlane.f32.xlu0 %v4378_v61  ;;  %v4735_v61 = vld [vmem:[#allocation8 + $0x28] sm:$0xff]  }
 0x41e   :  { %v757_v63 = vpop.xlane.xlu0 %756 }
 0x41f   :  { %v760_v0 = vmul.f32 0.0009765625, %v757_v63  ;;  %v4737_v63 = vld [vmem:[#allocation8 + $0x38] sm:$0xff]  }
 0x421   :  { %v762_v2 = vsub.f32 %v666_v56, %v760_v0  ;;  %v4731_v56 = vld [vmem:[#allocation8 + $0x8] sm:$0xff]   ;;  %v4738_v0 = vld [vmem:[#allocation7] sm:$0xff]  }
 0x422   :  { %v759_v1 = vpop.xlane.xlu0 %758 }
 0x423   :  { %v761_v3 = vmul.f32 0.0009765625, %v759_v1  ;;  %v764_v5 = vmul.f32 %v762_v2, %v762_v2  ;;  %v4739_v1 = vld [vmem:[#allocation7 + $0x8] sm:$0xff]  }
 0x425   :  { %v763_v4 = vsub.f32 %v669_v58, %v761_v3  ;;  %v4733_v58 = vld [vmem:[#allocation8 + $0x18] sm:$0xff]  }
 0x426   :  { %v4741_v3 = vld [vmem:[#allocation7 + $0x18] sm:$0xff]  }
 0x427   :  { %v765_v6 = vmul.f32 %v763_v4, %v763_v4 }
 0x429   :  { %v4476_v7 = vpack.c.bf16 %v765_v6, %v764_v5  ;;  %v4743_v5 = vld [vmem:[#allocation7 + $0x28] sm:$0xff]   ;;  %v4744_v6 = vld [vmem:[#allocation7 + $0x30] sm:$0xff]  }
 0x42b   :  { %4477 = vmatprep.subr.bf16.mxu1 %v4476_v7 }
 0x42c   :  { %4479 = vmatpush3.bf16.msra.mxu1 %v4476_v7  ;;  %v4745_v7 = vld [vmem:[#allocation7 + $0x38] sm:$0xff]  }
 0x42d   :  { %4392 = vmatprep.subr.bf16.mxu1 %v5528_v10 }
 0x42f   :  { %4384 = vmatmul.mubr.msk.f32.vlgmr.msra.gmra.mrb[2].mxu1 %vm674_vm0, %v5950_v60 }
 0x430   :  { %4394 = vmatprep.mubr.msk.bf16.mxu1 %vm5529_vm1, %v5528_v10 }
 0x502   :  { %v4385_v8 = vpop.f32.mrb[2].mxu1 }
 0x503   :  { %v832_v9 = vpop.f32.mrb[3].mxu1 }
 0x504   :  { %841 = vadd.xlane.f32.xlu1 %v832_v9 }
 0x508   :  { %843 = vadd.xlane.f32.xlu1 %v4385_v8 }
 0x591   :  { %v842_v11 = vpop.xlane.xlu1 %841 }
 0x592   :  { %v845_v12 = vmul.f32 0.0009765625, %v842_v11 }
 0x594   :  { %v847_v14 = vadd.f32 1e-05, %v845_v12 }
 0x595   :  { %v844_v15 = vpop.xlane.xlu1 %843 }
 0x596   :  { %4988 = vrsqrt.f32 %v847_v14  ;;  %v846_v16 = vmul.f32 0.0009765625, %v844_v15 }
 0x598   :  { %v848_v17 = vadd.f32 1e-05, %v846_v16 }
 0x59a   :  { %4990 = vrsqrt.f32 %v848_v17 }
 0x5a0   :  { %v4989_v18 = vpop.eup %4988 }
 0x5a1   :  { %v851_v20 = vmul.f32 %v4989_v18, %v762_v2  ;;  %v4740_v2 = vld [vmem:[#allocation7 + $0x10] sm:$0xff]  }
 0x5a3   :  { %v860_v21 = vmul.f32 %v3909_v19, %v851_v20 }
 0x5a4   :  { %v4991_v23 = vpop.eup %4990 }
 0x5a5   :  { %v852_v25 = vmul.f32 %v4991_v23, %v763_v4  ;;  %v869_v27 = vadd.f32 %v3910_v24, %v860_v21  ;;  %v4742_v4 = vld [vmem:[#allocation7 + $0x20] sm:$0xff]  }
 0x5a7   :  { %v861_v26 = vmul.f32 %v3909_v19, %v852_v25  ;;  %v871_v30 = vmax.f32 %v869_v27, 0.0  ;;  %v4746_v27 = vld [vmem:[#allocation13] ss:$16 sps:$4 sm:$0xff]  }
 0x5a9   :  { %v870_v28 = vadd.f32 %v3910_v24, %v861_v26 }
 0x5ab   :  { %v872_v31 = vmax.f32 %v870_v28, 0.0  ;;  %v4751_v28 = vld [vmem:[#allocation13 + $0x24] ss:$16 sps:$4 sm:$0xff]  }
 0x5ad   :  { %v5964_v32 = vpack.c.bf16 %v872_v31, %v871_v30  ;;  %v4749_v30 = vld [vmem:[#allocation13 + $0x20] ss:$16 sps:$4 sm:$0xff]  }
 0x5af   :  { %4387 = vmatpush3.bf16.msra.mxu0 %v5964_v32  ;;  %4393 = vmatpush3.bf16.msra.mxu1 %v5964_v32 }
 0x5b0   :  { %4398 = vmatprep.subr.bf16.mxu0 %v5528_v10 }
 0x5b2   :  { %4389 = vmatmul.mubr.msk.bf16.vlgmr.msra.gmra.mrb[8].mxu0 %vm674_vm0, %v4720_v33  ;;  %4395 = vmatmul.mubr.msk.bf16.vlgmr.msra.gmra.mrb[4].mxu1 %vm674_vm0, %v4721_v34  ;;  %v4754_v33 = vld [vmem:[#allocation13 + $0x44] ss:$16 sps:$4 sm:$0xff]   ;;  %v4752_v34 = vld [vmem:[#allocation13 + $0x40] ss:$16 sps:$4 sm:$0xff]  }
 0x5b3   :  { %4399 = vmatpush3.bf16.msra.mxu0 %v4722_v35  ;;  %4414 = vmatprep.mubr.msk.bf16.mxu0 %vm5529_vm1, %v5528_v10  ;;  %v4757_v35 = vld [vmem:[#allocation13 + $0x64] ss:$16 sps:$4 sm:$0xff]  }
 0x5b4   :  { %4400 = vmatprep.subr.bf16.mxu0 %v5528_v10  ;;  %4462 = vmatprep.mubr.msk.f32.mxu1 %vm674_vm0, %v5946_v44 }
 0x5b7   :  { %4401 = vmatpush3.bf16.msra.mxu0 %v4723_v36  ;;  %v4755_v36 = vld [vmem:[#allocation13 + $0x60] ss:$16 sps:$4 sm:$0xff]  }
 0x5b8   :  { %4402 = vmatprep.subr.bf16.mxu0 %v5528_v10 }
 0x5bb   :  { %4403 = vmatpush3.bf16.msra.mxu0 %v4724_v37  ;;  %v4758_v37 = vld [vmem:[#allocation13 + $0x80] ss:$16 sps:$4 sm:$0xff]  }
 0x5bc   :  { %4404 = vmatprep.subr.bf16.mxu0 %v5528_v10 }
 0x5bf   :  { %4405 = vmatpush3.bf16.msra.mxu0 %v4725_v38  ;;  %v4763_v38 = vld [vmem:[#allocation13 + $0xa4] ss:$16 sps:$4 sm:$0xff]  }
 0x5c0   :  { %4406 = vmatprep.subr.bf16.mxu0 %v5528_v10 }
 0x5c3   :  { %4407 = vmatpush3.bf16.msra.mxu0 %v4726_v39  ;;  %v4761_v39 = vld [vmem:[#allocation13 + $0xa0] ss:$16 sps:$4 sm:$0xff]  }
 0x5c4   :  { %4408 = vmatprep.subr.bf16.mxu0 %v5528_v10 }
 0x5c7   :  { %4409 = vmatpush3.bf16.msra.mxu0 %v4727_v40  ;;  %v4766_v40 = vld [vmem:[#allocation13 + $0xc4] ss:$16 sps:$4 sm:$0xff]  }
 0x5c8   :  { %4410 = vmatprep.subr.bf16.mxu0 %v5528_v10 }
 0x5cb   :  { %4411 = vmatpush3.bf16.msra.mxu0 %v4728_v41  ;;  %v4764_v41 = vld [vmem:[#allocation13 + $0xc0] ss:$16 sps:$4 sm:$0xff]  }
 0x5cc   :  { %4412 = vmatprep.subr.bf16.mxu0 %v5528_v10 }
 0x5cf   :  { %4413 = vmatpush3.bf16.msra.mxu0 %v4729_v42  ;;  %v4769_v42 = vld [vmem:[#allocation13 + $0xe4] ss:$16 sps:$4 sm:$0xff]  }
 0x5d0   :  { %4418 = vmatprep.subr.bf16.mxu0 %v5528_v10 }
 0x685   :  { %v918_v45 = vpop.f32.mrb[8].mxu0  ;;  %v970_v46 = vpop.f32.mrb[4].mxu1 }
 0x686   :  { %v4390_v47 = vpop.f32.mrb[9].mxu0  ;;  %v4396_v48 = vpop.f32.mrb[5].mxu1 }
 0x687   :  { %v921_v49 = vpop.f32.mrb[10].mxu0  ;;  %v973_v51 = vpop.f32.mrb[6].mxu1  ;;  %v4772_v47 = vld [vmem:[#allocation13 + $0xc] ss:$16 sps:$4 sm:$0xff]  }
 0x688   :  { %v925_v52 = vpack.c.bf16 %v921_v49, %v918_v45  ;;  %v4391_v53 = vpop.f32.mrb[11].mxu0  ;;  %v977_v54 = vpack.c.bf16 %v973_v51, %v970_v46  ;;  %v4397_v55 = vpop.f32.mrb[7].mxu1  ;;  %v4767_v45 = vld [vmem:[#allocation13 + $0xe0] ss:$16 sps:$4 sm:$0xff]   ;;  %v5530_v46 = vmov 0  }
 0x689   :  { %v3943_v55 = vld [vmem:[#allocation28] ss:$0 sm:$0xff] }
 0x68a   :  { %4415 = vmatmul.mubr.bf16.vlgmr.msra.gmra.mrb[12].mxu0 %v925_v52 }
 0x68b   :  { %4419 = vmatpush3.bf16.msra.mxu0 %v4730_v50  ;;  %4434 = vmatprep.mubr.msk.bf16.mxu0 %vm5529_vm1, %v5528_v10 }
 0x68c   :  { %4420 = vmatprep.subr.bf16.mxu0 %v5528_v10 }
 0x68f   :  { %4421 = vmatpush3.bf16.msra.mxu0 %v4731_v56 }
 0x690   :  { %4422 = vmatprep.subr.bf16.mxu0 %v5528_v10 }
 0x693   :  { %4423 = vmatpush3.bf16.msra.mxu0 %v4732_v57 }
 0x694   :  { %4424 = vmatprep.subr.bf16.mxu0 %v5528_v10 }
 0x697   :  { %4425 = vmatpush3.bf16.msra.mxu0 %v4733_v58 }
 0x698   :  { %4426 = vmatprep.subr.bf16.mxu0 %v5528_v10 }
 0x69b   :  { %4427 = vmatpush3.bf16.msra.mxu0 %v4734_v59  ;;  %v3944_v59 = vld [vmem:[#allocation29] ss:$0 sm:$0xff] }
 0x69c   :  { %4428 = vmatprep.subr.bf16.mxu0 %v5528_v10 }
 0x69f   :  { %4429 = vmatpush3.bf16.msra.mxu0 %v4735_v61 }
 0x6a0   :  { %4430 = vmatprep.subr.bf16.mxu0 %v5528_v10 }
 0x6a3   :  { %4431 = vmatpush3.bf16.msra.mxu0 %v4736_v62 }
 0x6a4   :  { %4432 = vmatprep.subr.bf16.mxu0 %v5528_v10 }
 0x6a7   :  { %4433 = vmatpush3.bf16.msra.mxu0 %v4737_v63 }
 0x6a8   :  { %4438 = vmatprep.subr.bf16.mxu0 %v5528_v10 }
 0x6aa   :  { %4435 = vmatmul.mubr.bf16.vlgmr.msra.gmra.mrb[12].mxu0 %v5964_v32 }
 0x6ab   :  { %4439 = vmatpush3.bf16.msra.mxu0 %v4738_v0  ;;  %4454 = vmatprep.mubr.msk.bf16.mxu0 %vm5529_vm1, %v5528_v10 }
 0x6ac   :  { %4440 = vmatprep.subr.bf16.mxu0 %v5528_v10 }
 0x6af   :  { %4441 = vmatpush3.bf16.msra.mxu0 %v4739_v1 }
 0x6b0   :  { %4442 = vmatprep.subr.bf16.mxu0 %v5528_v10 }
 0x6b3   :  { %4443 = vmatpush3.bf16.msra.mxu0 %v4740_v2 }
 0x6b4   :  { %4444 = vmatprep.subr.bf16.mxu0 %v5528_v10 }
 0x6b7   :  { %4445 = vmatpush3.bf16.msra.mxu0 %v4741_v3  ;;  %v4770_v3 = vld [vmem:[#allocation13 + $0x8] ss:$16 sps:$4 sm:$0xff]  }
 0x6b8   :  { %4446 = vmatprep.subr.bf16.mxu0 %v5528_v10 }
 0x6bb   :  { %4447 = vmatpush3.bf16.msra.mxu0 %v4742_v4 }
 0x6bc   :  { %4448 = vmatprep.subr.bf16.mxu0 %v5528_v10 }
 0x6bf   :  { %4449 = vmatpush3.bf16.msra.mxu0 %v4743_v5  ;;  %v4775_v5 = vld [vmem:[#allocation13 + $0x2c] ss:$16 sps:$4 sm:$0xff]  }
 0x6c0   :  { %4450 = vmatprep.subr.bf16.mxu0 %v5528_v10 }
 0x6c3   :  { %4451 = vmatpush3.bf16.msra.mxu0 %v4744_v6  ;;  %v4773_v6 = vld [vmem:[#allocation13 + $0x28] ss:$16 sps:$4 sm:$0xff]  }
 0x6c4   :  { %4452 = vmatprep.subr.bf16.mxu0 %v5528_v10 }
 0x6c7   :  { %4453 = vmatpush3.bf16.msra.mxu0 %v4745_v7  ;;  %v4778_v7 = vld [vmem:[#allocation13 + $0x4c] ss:$16 sps:$4 sm:$0xff]  }
 0x6ca   :  { %4455 = vmatmul.mubr.bf16.vlgmr.msra.gmra.mrb[12].mxu0 %v977_v54 }
 0x6cb   :  { %2847 = vmatprep.mubr.f32.mxu0 %v5528_v10 }
 0x79d   :  { %v1286_v8 = vpop.f32.mrb[12].mxu0 }
 0x79e   :  { %v4456_v9 = vpop.f32.mrb[13].mxu0 }
 0x79f   :  { %v1289_v11 = vpop.f32.mrb[14].mxu0  ;;  %v4781_v9 = vld [vmem:[#allocation13 + $0x6c] ss:$16 sps:$4 sm:$0xff]  }
 0x7a0   :  { %v4480_v12 = vpack.c.bf16 %v1289_v11, %v1286_v8  ;;  %v4457_v14 = vpop.f32.mrb[15].mxu0 }
 0x7a1   :  { %v4782_v14 = vld [vmem:[#allocation13 + $0x88] ss:$16 sps:$4 sm:$0xff]  }
 0x7a2   :  { %4481 = vmatprep.subr.bf16.mxu1 %v4480_v12 }
 0x7a3   :  { %4483 = vmatpush3.bf16.msra.mxu1 %v4480_v12  ;;  %v4784_v12 = vld [vmem:[#allocation13 + $0x8c] ss:$16 sps:$4 sm:$0xff]  }
 0x7a6   :  { %4463 = vmatmul.mubr.msk.f32.vlgmr.msra.gmra.mrb[8].mxu1 %vm674_vm0, %v5950_v60 }
 0x7a7   :  { %4469 = vmatprep.mubr.msk.f32.mxu1 %vm674_vm0, %v5946_v44  ;;  %v4748_v44 = vld [vmem:[#allocation13 + $0x4] ss:$16 sps:$4 sm:$0xff]  }
 0x879   :  { %v4464_v15 = vpop.f32.mrb[8].mxu1 }
 0x87a   :  { %1372 = vadd.xlane.f32.xlu1 %v4464_v15  ;;  %v1361_v16 = vpop.f32.mrb[9].mxu1  ;;  %v4787_v15 = vld [vmem:[#allocation13 + $0xac] ss:$16 sps:$4 sm:$0xff]  }
 0x87b   :  { %1370 = vadd.xlane.f32.xlu0 %v1361_v16  ;;  %v4785_v16 = vld [vmem:[#allocation13 + $0xa8] ss:$16 sps:$4 sm:$0xff]  }
 0x907   :  { %v1373_v17 = vpop.xlane.xlu1 %1372 }
 0x908   :  { %v1375_v18 = vmul.f32 0.0009765625, %v1373_v17  ;;  %v1371_v19 = vpop.xlane.xlu0 %1370  ;;  %v4790_v17 = vld [vmem:[#allocation13 + $0xcc] ss:$16 sps:$4 sm:$0xff]  }
 0x909   :  { %v1374_v20 = vmul.f32 0.0009765625, %v1371_v19  ;;  %v4793_v19 = vld [vmem:[#allocation13 + $0xec] ss:$16 sps:$4 sm:$0xff]  }
 0x90a   :  { %v1377_v21 = vsub.f32 %v1289_v11, %v1375_v18  ;;  %v4779_v11 = vld [vmem:[#allocation13 + $0x68] ss:$16 sps:$4 sm:$0xff]  }
 0x90b   :  { %v1376_v23 = vsub.f32 %v1286_v8, %v1374_v20  ;;  %v4776_v8 = vld [vmem:[#allocation13 + $0x48] ss:$16 sps:$4 sm:$0xff]  }
 0x90c   :  { %v1379_v24 = vmul.f32 %v1377_v21, %v1377_v21  ;;  %v4788_v18 = vld [vmem:[#allocation13 + $0xc8] ss:$16 sps:$4 sm:$0xff]  }
 0x90d   :  { %v1378_v25 = vmul.f32 %v1376_v23, %v1376_v23  ;;  %v4791_v20 = vld [vmem:[#allocation13 + $0xe8] ss:$16 sps:$4 sm:$0xff]  }
 0x90f   :  { %v4484_v26 = vpack.c.bf16 %v1379_v24, %v1378_v25  ;;  %v4799_v24 = vld [vmem:[#allocation11 + $0x24] ss:$16 sps:$4 sm:$0xff]   ;;  %v4797_v25 = vld [vmem:[#allocation11 + $0x20] ss:$16 sps:$4 sm:$0xff]  }
 0x911   :  { %4485 = vmatprep.subr.bf16.mxu1 %v4484_v26 }
 0x912   :  { %4487 = vmatpush3.bf16.msra.mxu1 %v4484_v26  ;;  %v4802_v26 = vld [vmem:[#allocation11 + $0x44] ss:$16 sps:$4 sm:$0xff]  }
 0x913   :  { %1808 = vmatprep.subr.bf16.mxu1 %v4748_v44  ;;  %v4805_v44 = vld [vmem:[#allocation11 + $0x64] ss:$16 sps:$4 sm:$0xff]  }
 0x915   :  { %4470 = vmatmul.mubr.msk.f32.vlgmr.msra.gmra.mrb[10].mxu1 %vm674_vm0, %v5950_v60  ;;  %v4760_v60 = vld [vmem:[#allocation13 + $0x84] ss:$16 sps:$4 sm:$0xff]  }
 0x916   :  { %1809 = vmatpush1.bf16.msra.mxu1 %v4746_v27  ;;  %1840 = vmatprep.mubr.bf16.mxu1 %v5530_v46  ;;  %v4800_v27 = vld [vmem:[#allocation11 + $0x40] ss:$16 sps:$4 sm:$0xff]  }
 0x917   :  { %1810 = vmatprep.subr.bf16.mxu1 %v4751_v28  ;;  %v4803_v28 = vld [vmem:[#allocation11 + $0x60] ss:$16 sps:$4 sm:$0xff]  }
 0x91a   :  { %1811 = vmatpush1.bf16.msra.mxu1 %v4749_v30  ;;  %v4808_v30 = vld [vmem:[#allocation11 + $0x84] ss:$16 sps:$4 sm:$0xff]  }
 0x91b   :  { %1812 = vmatprep.subr.bf16.mxu1 %v4754_v33  ;;  %v4809_v33 = vld [vmem:[#allocation11 + $0xa0] ss:$16 sps:$4 sm:$0xff]  }
 0x91e   :  { %1813 = vmatpush1.bf16.msra.mxu1 %v4752_v34  ;;  %v4814_v34 = vld [vmem:[#allocation11 + $0xc4] ss:$16 sps:$4 sm:$0xff]  }
 0x91f   :  { %1814 = vmatprep.subr.bf16.mxu1 %v4757_v35  ;;  %v4812_v35 = vld [vmem:[#allocation11 + $0xc0] ss:$16 sps:$4 sm:$0xff]  }
 0x922   :  { %1815 = vmatpush1.bf16.msra.mxu1 %v4755_v36  ;;  %v4817_v36 = vld [vmem:[#allocation11 + $0xe4] ss:$16 sps:$4 sm:$0xff]  }
 0x923   :  { %1816 = vmatprep.subr.bf16.mxu1 %v4760_v60  ;;  %v4815_v60 = vld [vmem:[#allocation11 + $0xe0] ss:$16 sps:$4 sm:$0xff]  }
 0x926   :  { %1817 = vmatpush1.bf16.msra.mxu1 %v4758_v37  ;;  %v4820_v37 = vld [vmem:[#allocation11 + $0x104] ss:$16 sps:$4 sm:$0xff]  }
 0x927   :  { %1818 = vmatprep.subr.bf16.mxu1 %v4763_v38  ;;  %v4818_v38 = vld [vmem:[#allocation11 + $0x100] ss:$16 sps:$4 sm:$0xff]  }
 0x92a   :  { %1819 = vmatpush1.bf16.msra.mxu1 %v4761_v39  ;;  %v4823_v39 = vld [vmem:[#allocation11 + $0x124] ss:$16 sps:$4 sm:$0xff]  }
 0x92b   :  { %1820 = vmatprep.subr.bf16.mxu1 %v4766_v40  ;;  %v4821_v40 = vld [vmem:[#allocation11 + $0x120] ss:$16 sps:$4 sm:$0xff]  }
 0x92e   :  { %1821 = vmatpush1.bf16.msra.mxu1 %v4764_v41  ;;  %v4826_v41 = vld [vmem:[#allocation11 + $0x144] ss:$16 sps:$4 sm:$0xff]  }
 0x92f   :  { %1822 = vmatprep.subr.bf16.mxu1 %v4769_v42  ;;  %v4824_v42 = vld [vmem:[#allocation11 + $0x140] ss:$16 sps:$4 sm:$0xff]  }
 0x932   :  { %1823 = vmatpush1.bf16.msra.mxu1 %v4767_v45  ;;  %v4829_v45 = vld [vmem:[#allocation11 + $0x164] ss:$16 sps:$4 sm:$0xff]  }
 0x933   :  { %1851 = vmatprep.subr.bf16.mxu1 %v4772_v47  ;;  %v4832_v47 = vld [vmem:[#allocation11 + $0x184] ss:$16 sps:$4 sm:$0xff]  }
 0x9e8   :  { %v4471_v31 = vpop.f32.mrb[10].mxu1 }
 0x9e9   :  { %1457 = vadd.xlane.f32.xlu1 %v4471_v31  ;;  %v1446_v32 = vpop.f32.mrb[11].mxu1  ;;  %v4806_v31 = vld [vmem:[#allocation11 + $0x80] ss:$16 sps:$4 sm:$0xff]  }
 0x9ea   :  { %1455 = vadd.xlane.f32.xlu0 %v1446_v32  ;;  %v4811_v32 = vld [vmem:[#allocation11 + $0xa4] ss:$16 sps:$4 sm:$0xff]  }
 0xa76   :  { %v1458_v48 = vpop.xlane.xlu1 %1457 }
 0xa77   :  { %v1460_v49 = vmul.f32 0.0009765625, %v1458_v48  ;;  %v1456_v50 = vpop.xlane.xlu0 %1455  ;;  %v4830_v48 = vld [vmem:[#allocation11 + $0x180] ss:$16 sps:$4 sm:$0xff]  }
 0xa78   :  { %v1459_v51 = vmul.f32 0.0009765625, %v1456_v50  ;;  %v4833_v50 = vld [vmem:[#allocation11 + $0x1a0] ss:$16 sps:$4 sm:$0xff]  }
 0xa79   :  { %v1462_v52 = vadd.f32 1e-05, %v1460_v49  ;;  %v4835_v49 = vld [vmem:[#allocation11 + $0x1a4] ss:$16 sps:$4 sm:$0xff]  }
 0xa7a   :  { %v1461_v53 = vadd.f32 1e-05, %v1459_v51  ;;  %v4838_v51 = vld [vmem:[#allocation11 + $0x1c4] ss:$16 sps:$4 sm:$0xff]  }
 0xa7b   :  { %4992 = vrsqrt.f32 %v1462_v52  ;;  %v4836_v52 = vld [vmem:[#allocation11 + $0x1c0] ss:$16 sps:$4 sm:$0xff]  }
 0xa7c   :  { %4994 = vrsqrt.f32 %v1461_v53  ;;  %v4841_v53 = vld [vmem:[#allocation11 + $0x1e4] ss:$16 sps:$4 sm:$0xff]  }
 0xa85   :  { %v4993_v54 = vpop.eup %4992 }
 0xa86   :  { %v4995_v56 = vpop.eup %4994  ;;  %v1466_v57 = vmul.f32 %v4993_v54, %v1377_v21  ;;  %v4796_v21 = vld [vmem:[#allocation11 + $0x4] ss:$16 sps:$4 sm:$0xff]   ;;  %v4839_v54 = vld [vmem:[#allocation11 + $0x1e0] ss:$16 sps:$4 sm:$0xff]  }
 0xa87   :  { %v1465_v58 = vmul.f32 %v4995_v56, %v1376_v23  ;;  %v4794_v23 = vld [vmem:[#allocation11] ss:$16 sps:$4 sm:$0xff]  }
 0xa88   :  { %v1475_v61 = vmul.f32 %v3943_v55, %v1466_v57  ;;  %v4842_v56 = vld [vmem:[#allocation11 + $0x200] ss:$16 sps:$4 sm:$0xff]   ;;  %v4847_v57 = vld [vmem:[#allocation11 + $0x224] ss:$16 sps:$4 sm:$0xff]  }
 0xa89   :  { %v1474_v62 = vmul.f32 %v3943_v55, %v1465_v58  ;;  %v4844_v55 = vld [vmem:[#allocation11 + $0x204] ss:$16 sps:$4 sm:$0xff]   ;;  %v4845_v58 = vld [vmem:[#allocation11 + $0x220] ss:$16 sps:$4 sm:$0xff]  }
 0xa8a   :  { %v1484_v63 = vadd.f32 %v3944_v59, %v1475_v61  ;;  %v4848_v61 = vld [vmem:[#allocation11 + $0x240] ss:$16 sps:$4 sm:$0xff]  }
 0xa8b   :  { %v1483_v0 = vadd.f32 %v3944_v59, %v1474_v62  ;;  %v4850_v59 = vld [vmem:[#allocation11 + $0x244] ss:$16 sps:$4 sm:$0xff]  }
 0xa8c   :  { %v1486_v1 = vmax.f32 %v1484_v63, 0.0  ;;  %v4853_v62 = vld [vmem:[#allocation11 + $0x264] ss:$16 sps:$4 sm:$0xff]   ;;  %v4851_v63 = vld [vmem:[#allocation11 + $0x260] ss:$16 sps:$4 sm:$0xff]  }
 0xa8d   :  { %v1485_v2 = vmax.f32 %v1483_v0, 0.0  ;;  %v4856_v0 = vld [vmem:[#allocation11 + $0x284] ss:$16 sps:$4 sm:$0xff]  }
 0xa8f   :  { %v1487_v4 = vpack.c.bf16 %v1486_v1, %v1485_v2  ;;  %v4854_v1 = vld [vmem:[#allocation11 + $0x280] ss:$16 sps:$4 sm:$0xff]   ;;  %v4859_v2 = vld [vmem:[#allocation11 + $0x2a4] ss:$16 sps:$4 sm:$0xff]  }
 0xa91   :  { %1841 = vmatmul.mubr.bf16.vlgmr.msra.gmra.mrb[12].mxu1 %v1487_v4 }
 0xa92   :  { %1852 = vmatpush1.bf16.msra.mxu1 %v4770_v3  ;;  %1883 = vmatprep.mubr.bf16.mxu1 %v5530_v46  ;;  %v4827_v46 = vld [vmem:[#allocation11 + $0x160] ss:$16 sps:$4 sm:$0xff]  }
 0xa93   :  { %1853 = vmatprep.subr.bf16.mxu1 %v4775_v5  ;;  %v4857_v3 = vld [vmem:[#allocation11 + $0x2a0] ss:$16 sps:$4 sm:$0xff]  }
 0xa94   :  { %v4860_v5 = vld [vmem:[#allocation11 + $0x2c0] ss:$16 sps:$4 sm:$0xff]  }
 0xa96   :  { %1854 = vmatpush1.bf16.msra.mxu1 %v4773_v6  ;;  %v4865_v6 = vld [vmem:[#allocation11 + $0x2e4] ss:$16 sps:$4 sm:$0xff]  }
 0xa97   :  { %1855 = vmatprep.subr.bf16.mxu1 %v4778_v7  ;;  %v4863_v7 = vld [vmem:[#allocation11 + $0x2e0] ss:$16 sps:$4 sm:$0xff]  }
 0xa9a   :  { %1856 = vmatpush1.bf16.msra.mxu1 %v4776_v8  ;;  %v4868_v8 = vld [vmem:[#allocation11 + $0x304] ss:$16 sps:$4 sm:$0xff]  }
 0xa9b   :  { %1857 = vmatprep.subr.bf16.mxu1 %v4781_v9  ;;  %v4866_v9 = vld [vmem:[#allocation11 + $0x300] ss:$16 sps:$4 sm:$0xff]  }
 0xa9e   :  { %1858 = vmatpush1.bf16.msra.mxu1 %v4779_v11  ;;  %v4871_v11 = vld [vmem:[#allocation11 + $0x324] ss:$16 sps:$4 sm:$0xff]  }
 0xa9f   :  { %1859 = vmatprep.subr.bf16.mxu1 %v4784_v12  ;;  %v4869_v12 = vld [vmem:[#allocation11 + $0x320] ss:$16 sps:$4 sm:$0xff]  }
 0xaa2   :  { %1860 = vmatpush1.bf16.msra.mxu1 %v4782_v14  ;;  %v4874_v14 = vld [vmem:[#allocation11 + $0x344] ss:$16 sps:$4 sm:$0xff]  }
 0xaa3   :  { %1861 = vmatprep.subr.bf16.mxu1 %v4787_v15  ;;  %v4872_v15 = vld [vmem:[#allocation11 + $0x340] ss:$16 sps:$4 sm:$0xff]  }
 0xaa6   :  { %1862 = vmatpush1.bf16.msra.mxu1 %v4785_v16  ;;  %v4877_v16 = vld [vmem:[#allocation11 + $0x364] ss:$16 sps:$4 sm:$0xff]  }
 0xaa7   :  { %1863 = vmatprep.subr.bf16.mxu1 %v4790_v17  ;;  %v4875_v17 = vld [vmem:[#allocation11 + $0x360] ss:$16 sps:$4 sm:$0xff]  }
 0xaaa   :  { %1864 = vmatpush1.bf16.msra.mxu1 %v4788_v18  ;;  %v4880_v18 = vld [vmem:[#allocation11 + $0x384] ss:$16 sps:$4 sm:$0xff]  }
 0xaab   :  { %1865 = vmatprep.subr.bf16.mxu1 %v4793_v19  ;;  %v4878_v19 = vld [vmem:[#allocation11 + $0x380] ss:$16 sps:$4 sm:$0xff]  }
 0xaae   :  { %1866 = vmatpush1.bf16.msra.mxu1 %v4791_v20  ;;  %v4883_v20 = vld [vmem:[#allocation11 + $0x3a4] ss:$16 sps:$4 sm:$0xff]  }
 0xaaf   :  { %2534 = vmatprep.subr.bf16.mxu1 %v4796_v21  ;;  %v4881_v21 = vld [vmem:[#allocation11 + $0x3a0] ss:$16 sps:$4 sm:$0xff]  }
 0xab1   :  { %1884 = vmatmul.mubr.bf16.vlgmr.msra.gmra.mrb[16].mxu1 %v1487_v4  ;;  %v4862_v4 = vld [vmem:[#allocation11 + $0x2c4] ss:$16 sps:$4 sm:$0xff]  }
 0xab2   :  { %2535 = vmatpush1.bf16.msra.mxu1 %v4794_v23  ;;  %2566 = vmatprep.mubr.bf16.mxu1 %v5934_v13  ;;  %v4886_v23 = vld [vmem:[#allocation11 + $0x3c4] ss:$16 sps:$4 sm:$0xff]  }
 0xab3   :  { %2536 = vmatprep.subr.bf16.mxu1 %v4799_v24  ;;  %v4884_v24 = vld [vmem:[#allocation11 + $0x3c0] ss:$16 sps:$4 sm:$0xff]  }
 0xab6   :  { %2537 = vmatpush1.bf16.msra.mxu1 %v4797_v25  ;;  %v4889_v25 = vld [vmem:[#allocation11 + $0x3e4] ss:$16 sps:$4 sm:$0xff]  }
 0xab7   :  { %2538 = vmatprep.subr.bf16.mxu1 %v4802_v26  ;;  %v4887_v26 = vld [vmem:[#allocation11 + $0x3e0] ss:$16 sps:$4 sm:$0xff]  }
 0xaba   :  { %2539 = vmatpush1.bf16.msra.mxu1 %v4800_v27  ;;  %v4892_v27 = vld [vmem:[#allocation11 + $0xc] ss:$16 sps:$4 sm:$0xff]  }
 0xabb   :  { %2540 = vmatprep.subr.bf16.mxu1 %v4805_v44  ;;  %v4890_v44 = vld [vmem:[#allocation11 + $0x8] ss:$16 sps:$4 sm:$0xff]  }
 0xabe   :  { %2541 = vmatpush1.bf16.msra.mxu1 %v4803_v28  ;;  %v4895_v28 = vld [vmem:[#allocation11 + $0x2c] ss:$16 sps:$4 sm:$0xff]  }
 0xabf   :  { %2542 = vmatprep.subr.bf16.mxu1 %v4808_v30  ;;  %v4893_v30 = vld [vmem:[#allocation11 + $0x28] ss:$16 sps:$4 sm:$0xff]  }
 0xac2   :  { %2543 = vmatpush1.bf16.msra.mxu1 %v4806_v31  ;;  %v4898_v31 = vld [vmem:[#allocation11 + $0x4c] ss:$16 sps:$4 sm:$0xff]  }
 0xac3   :  { %2544 = vmatprep.subr.bf16.mxu1 %v4811_v32  ;;  %v4896_v32 = vld [vmem:[#allocation11 + $0x48] ss:$16 sps:$4 sm:$0xff]  }
 0xac6   :  { %2545 = vmatpush1.bf16.msra.mxu1 %v4809_v33  ;;  %v4901_v33 = vld [vmem:[#allocation11 + $0x6c] ss:$16 sps:$4 sm:$0xff]  }
 0xac7   :  { %2546 = vmatprep.subr.bf16.mxu1 %v4814_v34  ;;  %v4899_v34 = vld [vmem:[#allocation11 + $0x68] ss:$16 sps:$4 sm:$0xff]  }
 0xaca   :  { %2547 = vmatpush1.bf16.msra.mxu1 %v4812_v35  ;;  %v4904_v35 = vld [vmem:[#allocation11 + $0x8c] ss:$16 sps:$4 sm:$0xff]  }
 0xacb   :  { %2548 = vmatprep.subr.bf16.mxu1 %v4817_v36  ;;  %v4902_v36 = vld [vmem:[#allocation11 + $0x88] ss:$16 sps:$4 sm:$0xff]  }
 0xace   :  { %2549 = vmatpush1.bf16.msra.mxu1 %v4815_v60  ;;  %v4907_v60 = vld [vmem:[#allocation11 + $0xac] ss:$16 sps:$4 sm:$0xff]  }
 0xacf   :  { %2550 = vmatprep.subr.bf16.mxu1 %v4820_v37  ;;  %v4905_v37 = vld [vmem:[#allocation11 + $0xa8] ss:$16 sps:$4 sm:$0xff]  }
 0xad2   :  { %2551 = vmatpush1.bf16.msra.mxu1 %v4818_v38  ;;  %v4910_v38 = vld [vmem:[#allocation11 + $0xcc] ss:$16 sps:$4 sm:$0xff]  }
 0xad3   :  { %2552 = vmatprep.subr.bf16.mxu1 %v4823_v39  ;;  %v4913_v39 = vld [vmem:[#allocation11 + $0xec] ss:$16 sps:$4 sm:$0xff]  }
 0xad6   :  { %2553 = vmatpush1.bf16.msra.mxu1 %v4821_v40  ;;  %v4911_v40 = vld [vmem:[#allocation11 + $0xe8] ss:$16 sps:$4 sm:$0xff]  }
 0xad7   :  { %2554 = vmatprep.subr.bf16.mxu1 %v4826_v41  ;;  %v4916_v41 = vld [vmem:[#allocation11 + $0x10c] ss:$16 sps:$4 sm:$0xff]  }
 0xada   :  { %2555 = vmatpush1.bf16.msra.mxu1 %v4824_v42  ;;  %v4914_v42 = vld [vmem:[#allocation11 + $0x108] ss:$16 sps:$4 sm:$0xff]  }
 0xadb   :  { %2556 = vmatprep.subr.bf16.mxu1 %v4829_v45  ;;  %v4919_v45 = vld [vmem:[#allocation11 + $0x12c] ss:$16 sps:$4 sm:$0xff]  }
 0xade   :  { %2557 = vmatpush1.bf16.msra.mxu1 %v4827_v46  ;;  %v4917_v46 = vld [vmem:[#allocation11 + $0x128] ss:$16 sps:$4 sm:$0xff]  }
 0xadf   :  { %2558 = vmatprep.subr.bf16.mxu1 %v4832_v47  ;;  %v4922_v47 = vld [vmem:[#allocation11 + $0x14c] ss:$16 sps:$4 sm:$0xff]  }
 0xae2   :  { %2559 = vmatpush1.bf16.msra.mxu1 %v4830_v48  ;;  %v4920_v48 = vld [vmem:[#allocation11 + $0x148] ss:$16 sps:$4 sm:$0xff]  }
 0xae3   :  { %2560 = vmatprep.subr.bf16.mxu1 %v4835_v49  ;;  %v4925_v49 = vld [vmem:[#allocation11 + $0x16c] ss:$16 sps:$4 sm:$0xff]  }
 0xae6   :  { %2561 = vmatpush1.bf16.msra.mxu1 %v4833_v50  ;;  %v4923_v50 = vld [vmem:[#allocation11 + $0x168] ss:$16 sps:$4 sm:$0xff]  }
 0xae7   :  { %2562 = vmatprep.subr.bf16.mxu1 %v4838_v51  ;;  %v4928_v51 = vld [vmem:[#allocation11 + $0x18c] ss:$16 sps:$4 sm:$0xff]  }
 0xaea   :  { %2563 = vmatpush1.bf16.msra.mxu1 %v4836_v52  ;;  %v4926_v52 = vld [vmem:[#allocation11 + $0x188] ss:$16 sps:$4 sm:$0xff]  }
 0xaeb   :  { %2564 = vmatprep.subr.bf16.mxu1 %v4841_v53  ;;  %v4931_v53 = vld [vmem:[#allocation11 + $0x1ac] ss:$16 sps:$4 sm:$0xff]  }
 0xaee   :  { %2565 = vmatpush1.bf16.msra.mxu1 %v4839_v54  ;;  %v4929_v54 = vld [vmem:[#allocation11 + $0x1a8] ss:$16 sps:$4 sm:$0xff]  }
 0xaef   :  { %2577 = vmatprep.subr.bf16.mxu1 %v4844_v55  ;;  %v4934_v55 = vld [vmem:[#allocation11 + $0x1cc] ss:$16 sps:$4 sm:$0xff]  }
 0xaf1   :  { %2567 = vmatmul.mubr.bf16.vlgmr.msra.gmra.mrb[12].mxu1 %v5937_v22 }
 0xaf2   :  { %2578 = vmatpush1.bf16.msra.mxu1 %v4842_v56  ;;  %2609 = vmatprep.mubr.bf16.mxu1 %v5940_v29  ;;  %v4932_v56 = vld [vmem:[#allocation11 + $0x1c8] ss:$16 sps:$4 sm:$0xff]  }
 0xaf3   :  { %2579 = vmatprep.subr.bf16.mxu1 %v4847_v57  ;;  %v4937_v57 = vld [vmem:[#allocation11 + $0x1ec] ss:$16 sps:$4 sm:$0xff]  }
 0xaf6   :  { %2580 = vmatpush1.bf16.msra.mxu1 %v4845_v58  ;;  %v4935_v58 = vld [vmem:[#allocation11 + $0x1e8] ss:$16 sps:$4 sm:$0xff]  }
 0xaf7   :  { %2581 = vmatprep.subr.bf16.mxu1 %v4850_v59  ;;  %v4940_v59 = vld [vmem:[#allocation11 + $0x20c] ss:$16 sps:$4 sm:$0xff]  }
 0xafa   :  { %2582 = vmatpush1.bf16.msra.mxu1 %v4848_v61  ;;  %v4938_v61 = vld [vmem:[#allocation11 + $0x208] ss:$16 sps:$4 sm:$0xff]  }
 0xafb   :  { %2583 = vmatprep.subr.bf16.mxu1 %v4853_v62  ;;  %v4943_v62 = vld [vmem:[#allocation11 + $0x22c] ss:$16 sps:$4 sm:$0xff]  }
 0xafe   :  { %2584 = vmatpush1.bf16.msra.mxu1 %v4851_v63  ;;  %v4941_v63 = vld [vmem:[#allocation11 + $0x228] ss:$16 sps:$4 sm:$0xff]  }
 0xaff   :  { %2585 = vmatprep.subr.bf16.mxu1 %v4856_v0  ;;  %v4946_v0 = vld [vmem:[#allocation11 + $0x24c] ss:$16 sps:$4 sm:$0xff]  }
 0xb02   :  { %2586 = vmatpush1.bf16.msra.mxu1 %v4854_v1  ;;  %v4944_v1 = vld [vmem:[#allocation11 + $0x248] ss:$16 sps:$4 sm:$0xff]  }
 0xb03   :  { %2587 = vmatprep.subr.bf16.mxu1 %v4859_v2  ;;  %v4949_v2 = vld [vmem:[#allocation11 + $0x26c] ss:$16 sps:$4 sm:$0xff]  }
 0xb06   :  { %2588 = vmatpush1.bf16.msra.mxu1 %v4857_v3  ;;  %v4947_v3 = vld [vmem:[#allocation11 + $0x268] ss:$16 sps:$4 sm:$0xff]  }
 0xb07   :  { %2589 = vmatprep.subr.bf16.mxu1 %v4862_v4  ;;  %v4952_v4 = vld [vmem:[#allocation11 + $0x28c] ss:$16 sps:$4 sm:$0xff]  }
 0xb0a   :  { %2590 = vmatpush1.bf16.msra.mxu1 %v4860_v5  ;;  %v4950_v5 = vld [vmem:[#allocation11 + $0x288] ss:$16 sps:$4 sm:$0xff]  }
 0xb0b   :  { %2591 = vmatprep.subr.bf16.mxu1 %v4865_v6  ;;  %v4955_v6 = vld [vmem:[#allocation11 + $0x2ac] ss:$16 sps:$4 sm:$0xff]  }
 0xb0e   :  { %2592 = vmatpush1.bf16.msra.mxu1 %v4863_v7  ;;  %v4958_v7 = vld [vmem:[#allocation11 + $0x2cc] ss:$16 sps:$4 sm:$0xff]  }
 0xb0f   :  { %2593 = vmatprep.subr.bf16.mxu1 %v4868_v8  ;;  %v4961_v8 = vld [vmem:[#allocation11 + $0x2ec] ss:$16 sps:$4 sm:$0xff]  }
 0xb12   :  { %2594 = vmatpush1.bf16.msra.mxu1 %v4866_v9  ;;  %v4959_v9 = vld [vmem:[#allocation11 + $0x2e8] ss:$16 sps:$4 sm:$0xff]  }
 0xb13   :  { %2595 = vmatprep.subr.bf16.mxu1 %v4871_v11  ;;  %v4964_v11 = vld [vmem:[#allocation11 + $0x30c] ss:$16 sps:$4 sm:$0xff]  }
 0xb16   :  { %2596 = vmatpush1.bf16.msra.mxu1 %v4869_v12  ;;  %v4962_v12 = vld [vmem:[#allocation11 + $0x308] ss:$16 sps:$4 sm:$0xff]  }
 0xb17   :  { %2597 = vmatprep.subr.bf16.mxu1 %v4874_v14  ;;  %v4967_v14 = vld [vmem:[#allocation11 + $0x32c] ss:$16 sps:$4 sm:$0xff]  }
 0xb1a   :  { %2598 = vmatpush1.bf16.msra.mxu1 %v4872_v15  ;;  %v4965_v15 = vld [vmem:[#allocation11 + $0x328] ss:$16 sps:$4 sm:$0xff]  }
 0xb1b   :  { %2599 = vmatprep.subr.bf16.mxu1 %v4877_v16  ;;  %v4970_v16 = vld [vmem:[#allocation11 + $0x34c] ss:$16 sps:$4 sm:$0xff]  }
 0xb1e   :  { %2600 = vmatpush1.bf16.msra.mxu1 %v4875_v17  ;;  %v4968_v17 = vld [vmem:[#allocation11 + $0x348] ss:$16 sps:$4 sm:$0xff]  }
 0xb1f   :  { %2601 = vmatprep.subr.bf16.mxu1 %v4880_v18  ;;  %v4973_v18 = vld [vmem:[#allocation11 + $0x36c] ss:$16 sps:$4 sm:$0xff]  }
 0xb22   :  { %2602 = vmatpush1.bf16.msra.mxu1 %v4878_v19  ;;  %v4971_v19 = vld [vmem:[#allocation11 + $0x368] ss:$16 sps:$4 sm:$0xff]  }
 0xb23   :  { %2603 = vmatprep.subr.bf16.mxu1 %v4883_v20  ;;  %v4976_v20 = vld [vmem:[#allocation11 + $0x38c] ss:$16 sps:$4 sm:$0xff]  }
 0xb26   :  { %2604 = vmatpush1.bf16.msra.mxu1 %v4881_v21  ;;  %v4974_v21 = vld [vmem:[#allocation11 + $0x388] ss:$16 sps:$4 sm:$0xff]  }
 0xb27   :  { %2605 = vmatprep.subr.bf16.mxu1 %v4886_v23  ;;  %v4979_v23 = vld [vmem:[#allocation11 + $0x3ac] ss:$16 sps:$4 sm:$0xff]  }
 0xb2a   :  { %2606 = vmatpush1.bf16.msra.mxu1 %v4884_v24  ;;  %v4977_v24 = vld [vmem:[#allocation11 + $0x3a8] ss:$16 sps:$4 sm:$0xff]  }
 0xb2b   :  { %2607 = vmatprep.subr.bf16.mxu1 %v4889_v25  ;;  %v4982_v25 = vld [vmem:[#allocation11 + $0x3cc] ss:$16 sps:$4 sm:$0xff]  }
 0xb2e   :  { %2608 = vmatpush1.bf16.msra.mxu1 %v4887_v26  ;;  %v4980_v26 = vld [vmem:[#allocation11 + $0x3c8] ss:$16 sps:$4 sm:$0xff]  }
 0xb2f   :  { %2620 = vmatprep.subr.bf16.mxu1 %v4892_v27  ;;  %v4985_v27 = vld [vmem:[#allocation11 + $0x3ec] ss:$16 sps:$4 sm:$0xff]  }
 0xb31   :  { %2610 = vmatmul.mubr.bf16.vlgmr.msra.gmra.mrb[12].mxu1 %v5943_v43 }
 0xb32   :  { %2621 = vmatpush1.bf16.msra.mxu1 %v4890_v44  ;;  %2652 = vmatprep.mubr.bf16.mxu1 %v5934_v13  ;;  %v4908_v13 = vld [vmem:[#allocation11 + $0xc8] ss:$16 sps:$4 sm:$0xff]  }
 0xb33   :  { %2622 = vmatprep.subr.bf16.mxu1 %v4895_v28  ;;  %v4983_v44 = vld [vmem:[#allocation11 + $0x3e8] ss:$16 sps:$4 sm:$0xff]  }
 0xb36   :  { %2623 = vmatpush1.bf16.msra.mxu1 %v4893_v30 }
 0xb37   :  { %2624 = vmatprep.subr.bf16.mxu1 %v4898_v31 }
 0xb3a   :  { %2625 = vmatpush1.bf16.msra.mxu1 %v4896_v32 }
 0xb3b   :  { %2626 = vmatprep.subr.bf16.mxu1 %v4901_v33 }
 0xb3e   :  { %2627 = vmatpush1.bf16.msra.mxu1 %v4899_v34 }
 0xb3f   :  { %2628 = vmatprep.subr.bf16.mxu1 %v4904_v35  ;;  %v6031_v35 = vld [vmem:[#allocation17] sm:$0xff] }
 0xb42   :  { %2629 = vmatpush1.bf16.msra.mxu1 %v4902_v36 }
 0xb43   :  { %2630 = vmatprep.subr.bf16.mxu1 %v4907_v60 }
 0xb46   :  { %2631 = vmatpush1.bf16.msra.mxu1 %v4905_v37  ;;  %v2876_v37 = vld [vmem:[#allocation22 + $0x80] sm:$0xff] }
 0xb47   :  { %2632 = vmatprep.subr.bf16.mxu1 %v4910_v38  ;;  %v2877_v38 = vld [vmem:[#allocation22 + $0x88] sm:$0xff] }
 0xb4a   :  { %2633 = vmatpush1.bf16.msra.mxu1 %v4908_v13 }
 0xb4b   :  { %2634 = vmatprep.subr.bf16.mxu1 %v4913_v39 }
 0xb4e   :  { %2635 = vmatpush1.bf16.msra.mxu1 %v4911_v40 }
 0xb4f   :  { %2636 = vmatprep.subr.bf16.mxu1 %v4916_v41 }
 0xb52   :  { %2637 = vmatpush1.bf16.msra.mxu1 %v4914_v42  ;;  %v6052_v42 = vpack.c.bf16 %v2877_v38, %v2876_v37  ;;  %v2892_v37 = vld [vmem:[#allocation22 + $0x100] sm:$0xff]  ;;  %v2893_v38 = vld [vmem:[#allocation22 + $0x108] sm:$0xff] }
 0xb53   :  { %2638 = vmatprep.subr.bf16.mxu1 %v4919_v45  ;;  %v2860_v45 = vld [vmem:[#allocation22] sm:$0xff] }
 0xb56   :  { %2639 = vmatpush1.bf16.msra.mxu1 %v4917_v46  ;;  %v2861_v46 = vld [vmem:[#allocation22 + $0x8] sm:$0xff] }
 0xb57   :  { %2640 = vmatprep.subr.bf16.mxu1 %v4922_v47  ;;  %v2878_v47 = vld [vmem:[#allocation22 + $0x90] sm:$0xff] }
 0xb5a   :  { %2641 = vmatpush1.bf16.msra.mxu1 %v4920_v48  ;;  %v2879_v48 = vld [vmem:[#allocation22 + $0x98] sm:$0xff] }
 0xb5b   :  { %2642 = vmatprep.subr.bf16.mxu1 %v4925_v49  ;;  %v6054_v49 = vpack.c.bf16 %v2861_v46, %v2860_v45  ;;  %v6108_v46 = vpack.c.bf16 %v2893_v38, %v2892_v37  ;;  %v2920_v37 = vld [vmem:[#allocation22 + $0x1e0] sm:$0xff]  ;;  %v2921_v38 = vld [vmem:[#allocation22 + $0x1e8] sm:$0xff] }
 0xb5e   :  { %2643 = vmatpush1.bf16.msra.mxu1 %v4923_v50  ;;  %v6057_v50 = vpack.c.bf16 %v2879_v48, %v2878_v47 }
 0xb5f   :  { %2644 = vmatprep.subr.bf16.mxu1 %v4928_v51  ;;  %v2862_v51 = vld [vmem:[#allocation22 + $0x10] sm:$0xff] }
 0xb62   :  { %2645 = vmatpush1.bf16.msra.mxu1 %v4926_v52  ;;  %v2863_v52 = vld [vmem:[#allocation22 + $0x18] sm:$0xff] }
 0xb63   :  { %2646 = vmatprep.subr.bf16.mxu1 %v4931_v53  ;;  %v2880_v53 = vld [vmem:[#allocation22 + $0xa0] sm:$0xff] }
 0xb66   :  { %2647 = vmatpush1.bf16.msra.mxu1 %v4929_v54  ;;  %v2881_v54 = vld [vmem:[#allocation22 + $0xa8] sm:$0xff] }
 0xb67   :  { %2648 = vmatprep.subr.bf16.mxu1 %v4934_v55  ;;  %v6063_v55 = vpack.c.bf16 %v2863_v52, %v2862_v51  ;;  %v2894_v51 = vld [vmem:[#allocation22 + $0x110] sm:$0xff]  ;;  %v2895_v52 = vld [vmem:[#allocation22 + $0x118] sm:$0xff] }
 0xb6a   :  { %2649 = vmatpush1.bf16.msra.mxu1 %v4932_v56  ;;  %v6066_v56 = vpack.c.bf16 %v2881_v54, %v2880_v53  ;;  %v2912_v53 = vld [vmem:[#allocation22 + $0x1a0] sm:$0xff]  ;;  %v2913_v54 = vld [vmem:[#allocation22 + $0x1a8] sm:$0xff] }
 0xb6b   :  { %2650 = vmatprep.subr.bf16.mxu1 %v4937_v57  ;;  %v2864_v57 = vld [vmem:[#allocation22 + $0x20] sm:$0xff] }
 0xb6e   :  { %2651 = vmatpush1.bf16.msra.mxu1 %v4935_v58  ;;  %v2865_v58 = vld [vmem:[#allocation22 + $0x28] sm:$0xff] }
 0xb6f   :  { %2663 = vmatprep.subr.bf16.mxu1 %v4940_v59  ;;  %v2882_v59 = vld [vmem:[#allocation22 + $0xb0] sm:$0xff] }
 0xb71   :  { %2653 = vmatmul.mubr.bf16.vlgmr.msra.gmra.mrb[16].mxu1 %v5937_v22  ;;  %v4953_v22 = vld [vmem:[#allocation11 + $0x2a8] ss:$16 sps:$4 sm:$0xff]  }
 0xb72   :  { %2664 = vmatpush1.bf16.msra.mxu1 %v4938_v61  ;;  %2695 = vmatprep.mubr.bf16.mxu1 %v5940_v29  ;;  %v4956_v29 = vld [vmem:[#allocation11 + $0x2c8] ss:$16 sps:$4 sm:$0xff]  }
 0xb73   :  { %2665 = vmatprep.subr.bf16.mxu1 %v4943_v62  ;;  %v2883_v61 = vld [vmem:[#allocation22 + $0xb8] sm:$0xff]  ;;  %v6071_v62 = vpack.c.bf16 %v2865_v58, %v2864_v57  ;;  %v6113_v57 = vpack.c.bf16 %v2895_v52, %v2894_v51  ;;  %v2922_v51 = vld [vmem:[#allocation22 + $0x1f0] sm:$0xff] }
 0xb74   :  { %v2923_v52 = vld [vmem:[#allocation22 + $0x1f8] sm:$0xff] }
 0xb76   :  { %2666 = vmatpush1.bf16.msra.mxu1 %v4941_v63  ;;  %v6074_v63 = vpack.c.bf16 %v2883_v61, %v2882_v59  ;;  %v6116_v59 = vpack.c.bf16 %v2913_v54, %v2912_v53  ;;  %v2896_v61 = vld [vmem:[#allocation22 + $0x120] sm:$0xff]  ;;  %v6146_v54 = vpack.c.bf16 %v2923_v52, %v2922_v51 }
 0xb77   :  { %2667 = vmatprep.subr.bf16.mxu1 %v4946_v0  ;;  %v2866_v0 = vld [vmem:[#allocation22 + $0x30] sm:$0xff] }
 0xb7a   :  { %2668 = vmatpush1.bf16.msra.mxu1 %v4944_v1  ;;  %v2867_v1 = vld [vmem:[#allocation22 + $0x38] sm:$0xff] }
 0xb7b   :  { %2669 = vmatprep.subr.bf16.mxu1 %v4949_v2  ;;  %v2884_v2 = vld [vmem:[#allocation22 + $0xc0] sm:$0xff] }
 0xb7e   :  { %2670 = vmatpush1.bf16.msra.mxu1 %v4947_v3  ;;  %v2885_v3 = vld [vmem:[#allocation22 + $0xc8] sm:$0xff] }
 0xb7f   :  { %2671 = vmatprep.subr.bf16.mxu1 %v4952_v4  ;;  %v6077_v4 = vpack.c.bf16 %v2867_v1, %v2866_v0  ;;  %v2897_v0 = vld [vmem:[#allocation22 + $0x128] sm:$0xff] }
 0xb82   :  { %2672 = vmatpush1.bf16.msra.mxu1 %v4950_v5  ;;  %v6080_v5 = vpack.c.bf16 %v2885_v3, %v2884_v2  ;;  %v2914_v2 = vld [vmem:[#allocation22 + $0x1b0] sm:$0xff]  ;;  %v2915_v3 = vld [vmem:[#allocation22 + $0x1b8] sm:$0xff] }
 0xb83   :  { %2673 = vmatprep.subr.bf16.mxu1 %v4955_v6  ;;  %v2868_v6 = vld [vmem:[#allocation22 + $0x40] sm:$0xff] }
 0xb86   :  { %2674 = vmatpush1.bf16.msra.mxu1 %v4953_v22  ;;  %v2869_v22 = vld [vmem:[#allocation22 + $0x48] sm:$0xff] }
 0xb87   :  { %2675 = vmatprep.subr.bf16.mxu1 %v4958_v7  ;;  %v2886_v7 = vld [vmem:[#allocation22 + $0xd0] sm:$0xff] }
 0xb8a   :  { %2676 = vmatpush1.bf16.msra.mxu1 %v4956_v29  ;;  %v2887_v29 = vld [vmem:[#allocation22 + $0xd8] sm:$0xff] }
 0xb8b   :  { %2677 = vmatprep.subr.bf16.mxu1 %v4961_v8  ;;  %v6083_v8 = vpack.c.bf16 %v2869_v22, %v2868_v6  ;;  %v6119_v6 = vpack.c.bf16 %v2897_v0, %v2896_v61  ;;  %v6122_v22 = vpack.c.bf16 %v2915_v3, %v2914_v2  ;;  %v2907_v61 = vld [vmem:[#allocation22 + $0x178] sm:$0xff] }
 0xb8e   :  { %2678 = vmatpush1.bf16.msra.mxu1 %v4959_v9  ;;  %v6086_v9 = vpack.c.bf16 %v2887_v29, %v2886_v7  ;;  %v2898_v7 = vld [vmem:[#allocation22 + $0x130] sm:$0xff]  ;;  %v2899_v29 = vld [vmem:[#allocation22 + $0x138] sm:$0xff] }
 0xb8f   :  { %2679 = vmatprep.subr.bf16.mxu1 %v4964_v11  ;;  %v2870_v11 = vld [vmem:[#allocation22 + $0x50] sm:$0xff] }
 0xb92   :  { %2680 = vmatpush1.bf16.msra.mxu1 %v4962_v12  ;;  %v2871_v12 = vld [vmem:[#allocation22 + $0x58] sm:$0xff] }
 0xb93   :  { %2681 = vmatprep.subr.bf16.mxu1 %v4967_v14  ;;  %v2888_v14 = vld [vmem:[#allocation22 + $0xe0] sm:$0xff] }
 0xb96   :  { %2682 = vmatpush1.bf16.msra.mxu1 %v4965_v15  ;;  %v2889_v15 = vld [vmem:[#allocation22 + $0xe8] sm:$0xff] }
 0xb97   :  { %2683 = vmatprep.subr.bf16.mxu1 %v4970_v16  ;;  %v6089_v16 = vpack.c.bf16 %v2871_v12, %v2870_v11  ;;  %v2916_v11 = vld [vmem:[#allocation22 + $0x1c0] sm:$0xff]  ;;  %v2917_v12 = vld [vmem:[#allocation22 + $0x1c8] sm:$0xff] }
 0xb9a   :  { %2684 = vmatpush1.bf16.msra.mxu1 %v4968_v17  ;;  %v6092_v17 = vpack.c.bf16 %v2889_v15, %v2888_v14  ;;  %v6125_v14 = vpack.c.bf16 %v2899_v29, %v2898_v7  ;;  %v6128_v15 = vpack.c.bf16 %v2917_v12, %v2916_v11  ;;  %v6154_v12 = vld [vmem:[#allocation23] sm:$0xff] }
 0xb9b   :  { %2685 = vmatprep.subr.bf16.mxu1 %v4973_v18  ;;  %v2872_v18 = vld [vmem:[#allocation22 + $0x60] sm:$0xff] }
 0xb9e   :  { %2686 = vmatpush1.bf16.msra.mxu1 %v4971_v19  ;;  %v2873_v19 = vld [vmem:[#allocation22 + $0x68] sm:$0xff] }
 0xb9f   :  { %2687 = vmatprep.subr.bf16.mxu1 %v4976_v20  ;;  %v2890_v20 = vld [vmem:[#allocation22 + $0xf0] sm:$0xff] }
 0xba2   :  { %2688 = vmatpush1.bf16.msra.mxu1 %v4974_v21  ;;  %v2891_v21 = vld [vmem:[#allocation22 + $0xf8] sm:$0xff] }
 0xba3   :  { %2689 = vmatprep.subr.bf16.mxu1 %v4979_v23  ;;  %v6095_v23 = vpack.c.bf16 %v2873_v19, %v2872_v18  ;;  %v2900_v18 = vld [vmem:[#allocation22 + $0x140] sm:$0xff]  ;;  %v2901_v19 = vld [vmem:[#allocation22 + $0x148] sm:$0xff] }
 0xba6   :  { %2690 = vmatpush1.bf16.msra.mxu1 %v4977_v24  ;;  %v6098_v24 = vpack.c.bf16 %v2891_v21, %v2890_v20  ;;  %v2918_v20 = vld [vmem:[#allocation22 + $0x1d0] sm:$0xff]  ;;  %v2919_v21 = vld [vmem:[#allocation22 + $0x1d8] sm:$0xff] }
 0xba7   :  { %2691 = vmatprep.subr.bf16.mxu1 %v4982_v25  ;;  %v2874_v25 = vld [vmem:[#allocation22 + $0x70] sm:$0xff] }
 0xbaa   :  { %2692 = vmatpush1.bf16.msra.mxu1 %v4980_v26  ;;  %v2875_v26 = vld [vmem:[#allocation22 + $0x78] sm:$0xff] }
 0xbab   :  { %2693 = vmatprep.subr.bf16.mxu1 %v4985_v27  ;;  %v2908_v27 = vld [vmem:[#allocation22 + $0x180] sm:$0xff] }
 0xbae   :  { %2694 = vmatpush1.bf16.msra.mxu1 %v4983_v44  ;;  %v2909_v44 = vld [vmem:[#allocation22 + $0x188] sm:$0xff] }
 0xbb1   :  { %2696 = vmatmul.mubr.bf16.vlgmr.msra.gmra.mrb[16].mxu1 %v5943_v43  ;;  %v6036_v43 = vld [vmem:[#allocation17 + $0x8] sm:$0xff] }
 0xbb2   :  { %2770 = vmatprep.mubr.f32.mxu1 %v5528_v10 }
 0xc04   :  { %v6019_v28 = vpop.f32.mrb[12].mxu1 }
 0xc05   :  { %v6021_v30 = vpop.f32.mrb[13].mxu1 }
 0xc06   :  { %v6023_v31 = vpop.f32.mrb[14].mxu1 }
 0xc07   :  { %v4490_v32 = vpack.c.bf16 %v6023_v31, %v6019_v28  ;;  %v6027_v33 = vpop.f32.mrb[15].mxu1 }
 0xc08   :  { %v4488_v34 = vpack.c.bf16 %v6027_v33, %v6021_v30 }
 0xc0a   :  { %4489 = vmatprep.subr.bf16.mxu1 %v4488_v34  ;;  %v6104_v34 = vpack.c.bf16 %v2909_v44, %v2908_v27  ;;  %v2902_v27 = vld [vmem:[#allocation22 + $0x150] sm:$0xff]  ;;  %v2903_v44 = vld [vmem:[#allocation22 + $0x158] sm:$0xff] }
 0xc0b   :  { %4491 = vmatpush1.bf16.msra.mxu1 %v4490_v32  ;;  %v6101_v32 = vpack.c.bf16 %v2875_v26, %v2874_v25  ;;  %v6131_v25 = vpack.c.bf16 %v2901_v19, %v2900_v18  ;;  %v6134_v26 = vpack.c.bf16 %v2919_v21, %v2918_v20  ;;  %v6158_v19 = vcombine.high %v6154_v12, %v6154_v12 }
 0xc0e   :  { %4105 = vmatmul.mubr.msk.f32.vlgmr.msra.gmra.mrb[20].mxu1 %vm674_vm0, %v6031_v35 }
 0xc0f   :  { %2776 = vmatprep.mubr.f32.mxu1 %v5528_v10 }
 0xc12   :  { %4106 = vmatmul.mubr.msk.f32.gmra.mrb[22].mxu1 %vm674_vm0, %v6036_v43 }
 0xc84   :  { %v6040_v36 = vpop.f32.mrb[16].mxu1 }
 0xc85   :  { %v6042_v60 = vpop.f32.mrb[17].mxu1 }
 0xc86   :  { %v6044_v13 = vpop.f32.mrb[18].mxu1 }
 0xc87   :  { %v4494_v39 = vpack.c.bf16 %v6044_v13, %v6040_v36  ;;  %v6048_v40 = vpop.f32.mrb[19].mxu1 }
 0xc88   :  { %v4492_v41 = vpack.c.bf16 %v6048_v40, %v6042_v60 }
 0xc8a   :  { %4493 = vmatprep.subr.bf16.mxu0 %v4492_v41  ;;  %v2911_v41 = vld [vmem:[#allocation22 + $0x198] sm:$0xff] }
 0xc8b   :  { %4495 = vmatpush1.bf16.msra.mxu0 %v4494_v39  ;;  %v2910_v39 = vld [vmem:[#allocation22 + $0x190] sm:$0xff] }
 0xc8c   :  { %4497 = vmatprep.subr.bf16.mxu0 %v6052_v42  ;;  %v6110_v48 = vpack.c.bf16 %v2911_v41, %v2910_v39  ;;  %v6137_v39 = vpack.c.bf16 %v2903_v44, %v2902_v27  ;;  %v6140_v41 = vpack.c.bf16 %v2921_v38, %v2920_v37  ;;  %v6164_v44 = vld [vmem:[#allocation23 + $0x8] sm:$0xff] }
 0xc8d   :  { %v6168_v37 = vcombine.high %v6164_v44, %v6164_v44 }
 0xc8e   :  { %4107 = vmatmul.mubr.msk.f32.vlgmr.msra.gmra.mrb[16].mxu0 %vm674_vm0, %v6031_v35 }
 0xc8f   :  { %2853 = vmatprep.mubr.f32.mxu0 %v5528_v10  ;;  %4499 = vmatpush3.bf16.msra.mxu0 %v6054_v49 }
 0xc90   :  { %4501 = vmatprep.subr.bf16.mxu0 %v6057_v50 }
 0xc92   :  { %4108 = vmatmul.mubr.msk.f32.gmra.mrb[18].mxu0 %vm674_vm0, %v6036_v43 }
 0xc93   :  { %4503 = vmatpush3.bf16.msra.mxu0 %v6063_v55 }
 0xc94   :  { %4505 = vmatprep.subr.bf16.mxu0 %v6066_v56 }
 0xc97   :  { %4507 = vmatpush3.bf16.msra.mxu0 %v6071_v62 }
 0xc98   :  { %4509 = vmatprep.subr.bf16.mxu0 %v6074_v63 }
 0xc9b   :  { %4511 = vmatpush3.bf16.msra.mxu0 %v6077_v4 }
 0xc9c   :  { %4513 = vmatprep.subr.bf16.mxu0 %v6080_v5 }
 0xc9f   :  { %4515 = vmatpush3.bf16.msra.mxu0 %v6083_v8 }
 0xca0   :  { %4517 = vmatprep.subr.bf16.mxu0 %v6086_v9 }
 0xca3   :  { %4519 = vmatpush3.bf16.msra.mxu0 %v6089_v16 }
 0xca4   :  { %4521 = vmatprep.subr.bf16.mxu0 %v6092_v17 }
 0xca7   :  { %4523 = vmatpush3.bf16.msra.mxu0 %v6095_v23 }
 0xca8   :  { %4525 = vmatprep.subr.bf16.mxu0 %v6098_v24 }
 0xcab   :  { %4527 = vmatpush3.bf16.msra.mxu0 %v6101_v32 }
 0xcac   :  { %4529 = vmatprep.subr.bf16.mxu0 %v6104_v34 }
 0xce1   :  { %v2772_v45 = vpop.f32.mrb[20].mxu1 }
 0xce2   :  { %v2774_v47 = vpop.f32.mrb[21].mxu1 }
 0xce3   :  { %2988 = vmatprep.mubr.f32.mxu0 %v2774_v47  ;;  %v2905_v47 = vld [vmem:[#allocation22 + $0x168] sm:$0xff] }
 0xce4   :  { %2989 = vmatmul.mubr.f32.vlgmr.msra.gmra.mrb[20].mxu0 %v2772_v45  ;;  %v2904_v45 = vld [vmem:[#allocation22 + $0x160] sm:$0xff] }
 0xce5   :  { %4531 = vmatpush3.bf16.msra.mxu0 %v6108_v46  ;;  %v2778_v58 = vpop.f32.mrb[22].mxu1  ;;  %v6143_v53 = vpack.c.bf16 %v2905_v47, %v2904_v45 }
 0xce6   :  { %4533 = vmatprep.subr.bf16.mxu0 %v6110_v48  ;;  %v2780_v1 = vpop.f32.mrb[23].mxu1 }
 0xce7   :  { %2993 = vmatprep.mubr.f32.mxu0 %v2780_v1 }
 0xce8   :  { %2994 = vmatmul.mubr.f32.gmra.mrb[22].mxu0 %v2778_v58  ;;  %v2906_v58 = vld [vmem:[#allocation22 + $0x170] sm:$0xff] }
 0xce9   :  { %4535 = vmatpush3.bf16.msra.mxu0 %v6113_v57  ;;  %v6149_v0 = vpack.c.bf16 %v2907_v61, %v2906_v58 }
 0xcea   :  { %4537 = vmatprep.subr.bf16.mxu0 %v6116_v59 }
 0xced   :  { %4539 = vmatpush3.bf16.msra.mxu0 %v6119_v6 }
 0xcee   :  { %4541 = vmatprep.subr.bf16.mxu0 %v6122_v22 }
 0xcf1   :  { %4543 = vmatpush3.bf16.msra.mxu0 %v6125_v14 }
 0xcf2   :  { %4545 = vmatprep.subr.bf16.mxu0 %v6128_v15 }
 0xcf5   :  { %4547 = vmatpush3.bf16.msra.mxu0 %v6131_v25 }
 0xcf6   :  { %4549 = vmatprep.subr.bf16.mxu0 %v6134_v26 }
 0xcf9   :  { %4551 = vmatpush3.bf16.msra.mxu0 %v6137_v39 }
 0xcfa   :  { %4553 = vmatprep.subr.bf16.mxu0 %v6140_v41 }
 0xcfd   :  { %4555 = vmatpush3.bf16.msra.mxu0 %v6143_v53 }
 0xcfe   :  { %4557 = vmatprep.subr.bf16.mxu0 %v6146_v54 }
 0xd01   :  { %4559 = vmatpush3.bf16.msra.mxu0 %v6149_v0 }
 0xd02   :  { %4109 = vmatprep.subr.msk.mxu0 %vm3087_vm2, %v6158_v19 }
 0xd61   :  { %v2849_v1 = vpop.f32.mrb[16].mxu0 }
 0xd62   :  { %v2851_v2 = vpop.f32.mrb[17].mxu0 }
 0xd63   :  { %3063 = vmatprep.mubr.f32.mxu0 %v2851_v2 }
 0xd64   :  { %3064 = vmatmul.mubr.f32.vlgmr.msra.gmra.mrb[24].mxu0 %v2849_v1 }
 0xd65   :  { %v2855_v3 = vpop.f32.mrb[18].mxu0  ;;  %4110 = vmatpush1.msk.msra.mxu0 %vm3087_vm2, %v6154_v12 }
 0xd66   :  { %v2857_v7 = vpop.f32.mrb[19].mxu0  ;;  %4113 = vmatprep.subr.msk.mxu0 %vm3087_vm2, %v6168_v37 }
 0xd67   :  { %3068 = vmatprep.mubr.f32.mxu0 %v2857_v7 }
 0xd68   :  { %3069 = vmatmul.mubr.f32.gmra.mrb[26].mxu0 %v2855_v3 }
 0xd69   :  { %3160 = vmatprep.mubr.f32.mxu0 %v5528_v10 }
 0xdb7   :  { %v4252_v29 = vpop.f32.mrb[20].mxu0 }
 0xdb8   :  { %v4253_v11 = vpop.f32.mrb[21].mxu0 }
 0xdb9   :  { %v4254_v18 = vadd.f32 %v4253_v11, %v4252_v29 }
 0xdbb   :  { %v4255_v20 = vpop.f32.mrb[22].mxu0 }
 0xdbc   :  { %v4256_v21 = vpop.f32.mrb[23].mxu0 }
 0xdbd   :  { %v4257_v27 = vadd.f32 %v4256_v21, %v4255_v20 }
 0xe37   :  { %v4290_v38 = vpop.f32.mrb[24].mxu0 }
 0xe38   :  { %v4291_v45 = vpop.f32.mrb[25].mxu0 }
 0xe39   :  { %v4292_v47 = vadd.f32 %v4291_v45, %v4290_v38 }
 0xe3b   :  { %v3066_v51 = vadd.f32 %v4292_v47, %v4254_v18  ;;  %v4293_v52 = vpop.f32.mrb[26].mxu0 }
 0xe3c   :  { %v4294_v58 = vpop.f32.mrb[27].mxu0 }
 0xe3d   :  { %v4295_v61 = vadd.f32 %v4294_v58, %v4293_v52  ;;  %4111 = vmatmul.mubr.msk.f32.vlgmr.msra.gmra.mrb[28].mxu0 %vm3080_vm3, %v3066_v51 }
 0xe3e   :  { %3166 = vmatprep.mubr.f32.mxu0 %v5528_v10  ;;  %4114 = vmatpush1.msk.msra.mxu0 %vm3087_vm2, %v6164_v44 }
 0xe3f   :  { %v3071_v1 = vadd.f32 %v4295_v61, %v4257_v27 }
 0xe41   :  { %4112 = vmatmul.mubr.msk.f32.gmra.mrb[30].mxu0 %vm3080_vm3, %v3071_v1 }
 0xe42   :  { %3237 = vmatprep.mubr.f32.mxu0 %v5528_v10 }
 0xe45   :  { %4115 = vmatmul.mubr.msk.f32.vlgmr.msra.gmra.mrb[32].mxu0 %vm3080_vm3, %v3066_v51 }
 0xe46   :  { %3243 = vmatprep.mubr.f32.mxu0 %v5528_v10 }
 0xe49   :  { %4116 = vmatmul.mubr.msk.f32.gmra.mrb[34].mxu0 %vm3080_vm3, %v3071_v1 }
 0xe4a   :  { %3338 = vmatprep.mubr.f32.mxu0 %v5528_v10 }
 0xf10   :  { %v3162_v2 = vpop.f32.mrb[28].mxu0 }
 0xf11   :  { %v3250_v3 = vmul.f32 0.0009765625, %v3162_v2  ;;  %v3164_v7 = vpop.f32.mrb[29].mxu0 }
 0xf12   :  { %v3251_v29 = vmul.f32 0.0009765625, %v3164_v7 }
 0xf13   :  { %v6183_v11 = vsub.f32 %v6019_v28, %v3250_v3 }
 0xf14   :  { %v6186_v18 = vsub.f32 %v6021_v30, %v3251_v29  ;;  %v3168_v20 = vpop.f32.mrb[30].mxu0 }
 0xf15   :  { %v3254_v21 = vmul.f32 0.0009765625, %v3168_v20  ;;  %v3170_v27 = vpop.f32.mrb[31].mxu0 }
 0xf16   :  { %v3255_v38 = vmul.f32 0.0009765625, %v3170_v27  ;;  %v3267_v30 = vmul.f32 %v6186_v18, %v6186_v18 }
 0xf17   :  { %v6189_v45 = vsub.f32 %v6023_v31, %v3254_v21  ;;  %v3266_v31 = vmul.f32 %v6183_v11, %v6183_v11 }
 0xf18   :  { %v6192_v47 = vsub.f32 %v6027_v33, %v3255_v38  ;;  %v3239_v51 = vpop.f32.mrb[32].mxu0 }
 0xf19   :  { %v3270_v52 = vmul.f32 %v6189_v45, %v6189_v45  ;;  %v3252_v58 = vmul.f32 0.0009765625, %v3239_v51  ;;  %v3241_v28 = vpop.f32.mrb[33].mxu0 }
 0xf1a   :  { %v3271_v61 = vmul.f32 %v6192_v47, %v6192_v47  ;;  %v3253_v1 = vmul.f32 0.0009765625, %v3241_v28 }
 0xf1b   :  { %v6203_v2 = vsub.f32 %v6040_v36, %v3252_v58  ;;  %v4562_v29 = vpack.c.bf16 %v3270_v52, %v3266_v31 }
 0xf1c   :  { %v6206_v33 = vsub.f32 %v6042_v60, %v3253_v1  ;;  %v3245_v3 = vpop.f32.mrb[34].mxu0  ;;  %v4560_v7 = vpack.c.bf16 %v3271_v61, %v3267_v30  ;;  %v3770_v61 = vld [vmem:[#allocation31] sm:$0xf] }
 0xf1d   :  { %v3256_v20 = vmul.f32 0.0009765625, %v3245_v3  ;;  %v3247_v21 = vpop.f32.mrb[35].mxu0 }
 0xf1e   :  { %v3257_v27 = vmul.f32 0.0009765625, %v3247_v21  ;;  %4561 = vmatprep.subr.bf16.mxu0 %v4560_v7  ;;  %v3269_v60 = vmul.f32 %v6206_v33, %v6206_v33 }
 0xf1f   :  { %v6209_v38 = vsub.f32 %v6044_v13, %v3256_v20  ;;  %4563 = vmatpush1.bf16.msra.mxu0 %v4562_v29  ;;  %v3268_v13 = vmul.f32 %v6203_v2, %v6203_v2  ;;  %v3800_v29 = vld [vmem:[#allocation32] sm:$0xf] }
 0xf20   :  { %v6212_v51 = vsub.f32 %v6048_v40, %v3257_v27 }
 0xf21   :  { %v3272_v36 = vmul.f32 %v6209_v38, %v6209_v38 }
 0xf22   :  { %v3273_v52 = vmul.f32 %v6212_v51, %v6212_v51  ;;  %4117 = vmatmul.mubr.msk.f32.vlgmr.msra.gmra.mrb[36].mxu0 %vm674_vm0, %v6031_v35 }
 0xf23   :  { %3344 = vmatprep.mubr.f32.mxu0 %v5528_v10  ;;  %v4566_v40 = vpack.c.bf16 %v3272_v36, %v3268_v13 }
 0xf24   :  { %v4564_v58 = vpack.c.bf16 %v3273_v52, %v3269_v60 }
 0xf26   :  { %4565 = vmatprep.subr.bf16.mxu0 %v4564_v58  ;;  %4118 = vmatmul.mubr.msk.f32.gmra.mrb[38].mxu0 %vm674_vm0, %v6036_v43 }
 0xf27   :  { %4567 = vmatpush1.bf16.msra.mxu0 %v4566_v40  ;;  %3415 = vmatprep.mubr.f32.mxu0 %v5528_v10 }
 0xf28   :  { %4569 = vmatprep.subr.bf16.mxu0 %v6052_v42 }
 0xf2a   :  { %4119 = vmatmul.mubr.msk.f32.vlgmr.msra.gmra.mrb[40].mxu0 %vm674_vm0, %v6031_v35 }
 0xf2b   :  { %3421 = vmatprep.mubr.f32.mxu0 %v5528_v10  ;;  %4571 = vmatpush3.bf16.msra.mxu0 %v6054_v49 }
 0xf2c   :  { %4573 = vmatprep.subr.bf16.mxu0 %v6057_v50 }
 0xf2e   :  { %4120 = vmatmul.mubr.msk.f32.gmra.mrb[42].mxu0 %vm674_vm0, %v6036_v43 }
 0xf2f   :  { %4575 = vmatpush3.bf16.msra.mxu0 %v6063_v55 }
 0xf30   :  { %4577 = vmatprep.subr.bf16.mxu0 %v6066_v56 }
 0xf33   :  { %4579 = vmatpush3.bf16.msra.mxu0 %v6071_v62 }
 0xf34   :  { %4581 = vmatprep.subr.bf16.mxu0 %v6074_v63 }
 0xf37   :  { %4583 = vmatpush3.bf16.msra.mxu0 %v6077_v4 }
 0xf38   :  { %4585 = vmatprep.subr.bf16.mxu0 %v6080_v5 }
 0xf3b   :  { %4587 = vmatpush3.bf16.msra.mxu0 %v6083_v8 }
 0xf3c   :  { %4589 = vmatprep.subr.bf16.mxu0 %v6086_v9 }
 0xf3f   :  { %4591 = vmatpush3.bf16.msra.mxu0 %v6089_v16 }
 0xf40   :  { %4593 = vmatprep.subr.bf16.mxu0 %v6092_v17 }
 0xf43   :  { %4595 = vmatpush3.bf16.msra.mxu0 %v6095_v23 }
 0xf44   :  { %4597 = vmatprep.subr.bf16.mxu0 %v6098_v24 }
 0xf47   :  { %4599 = vmatpush3.bf16.msra.mxu0 %v6101_v32 }
 0xf48   :  { %4601 = vmatprep.subr.bf16.mxu0 %v6104_v34 }
 0xff5   :  { %v3340_v35 = vpop.f32.mrb[36].mxu0 }
 0xff6   :  { %v3342_v43 = vpop.f32.mrb[37].mxu0 }
 0xff7   :  { %3492 = vmatprep.mubr.f32.mxu0 %v3342_v43 }
 0xff8   :  { %3493 = vmatmul.mubr.f32.vlgmr.msra.gmra.mrb[44].mxu0 %v3340_v35 }
 0xff9   :  { %4603 = vmatpush3.bf16.msra.mxu0 %v6108_v46  ;;  %v3346_v42 = vpop.f32.mrb[38].mxu0 }
 0xffa   :  { %4605 = vmatprep.subr.bf16.mxu0 %v6110_v48  ;;  %v3348_v49 = vpop.f32.mrb[39].mxu0 }
 0xffb   :  { %3497 = vmatprep.mubr.f32.mxu0 %v3348_v49 }
 0xffc   :  { %3498 = vmatmul.mubr.f32.gmra.mrb[46].mxu0 %v3346_v42 }
 0xffd   :  { %4607 = vmatpush3.bf16.msra.mxu0 %v6113_v57  ;;  %v3417_v50 = vpop.f32.mrb[40].mxu0 }
 0xffe   :  { %4609 = vmatprep.subr.bf16.mxu0 %v6116_v59  ;;  %v3419_v55 = vpop.f32.mrb[41].mxu0 }
 0xfff   :  { %3567 = vmatprep.mubr.f32.mxu0 %v3419_v55 }
0x1001   :  { %4611 = vmatpush3.bf16.msra.mxu0 %v6119_v6  ;;  %v3423_v56 = vpop.f32.mrb[42].mxu0 }
0x1002   :  { %4613 = vmatprep.subr.bf16.mxu0 %v6122_v22  ;;  %v3425_v62 = vpop.f32.mrb[43].mxu0 }
0x1005   :  { %4615 = vmatpush3.bf16.msra.mxu0 %v6125_v14  ;;  %v3772_v14 = vlaneseq }
0x1006   :  { %4617 = vmatprep.subr.bf16.mxu0 %v6128_v15 }
0x1009   :  { %4619 = vmatpush3.bf16.msra.mxu0 %v6131_v25 }
0x100a   :  { %4621 = vmatprep.subr.bf16.mxu0 %v6134_v26 }
0x100d   :  { %4623 = vmatpush3.bf16.msra.mxu0 %v6137_v39 }
0x100e   :  { %4625 = vmatprep.subr.bf16.mxu0 %v6140_v41 }
0x1011   :  { %4627 = vmatpush3.bf16.msra.mxu0 %v6143_v53 }
0x1012   :  { %4629 = vmatprep.subr.bf16.mxu0 %v6146_v54  ;;  %v3773_v54 = vshrl.u32 %v3772_v14, 7 }
0x1014   :  { %v3774_v28 = vsub.s32 0, %v3773_v54  ;;  %v3778_v1 = vsub.s32 1, %v3773_v54  ;;  %v3782_v55 = vsub.s32 2, %v3773_v54 }
0x1015   :  { %4631 = vmatpush3.bf16.msra.mxu0 %v6149_v0 }
0x1016   :  { %4121 = vmatprep.subr.msk.mxu0 %vm3087_vm2, %v6158_v19  ;;  %v3775_v27 = vrot.slane %v3770_v61, %v3774_v28  ;;  %v3779_v52 = vrot.slane %v3770_v61, %v3778_v1  ;;  %v3805_v35 = vrot.slane %v3800_v29, %v3774_v28  ;;  %v3809_v49 = vrot.slane %v3800_v29, %v3778_v1 }
0x1018   :  { %3568 = vmatmul.mubr.f32.vlgmr.msra.gmra.mrb[48].mxu0 %v3417_v50 }
0x1019   :  { %3572 = vmatprep.mubr.f32.mxu0 %v3425_v62  ;;  %4122 = vmatpush1.msk.msra.mxu0 %vm3087_vm2, %v6154_v12 }
0x101a   :  { %4125 = vmatprep.subr.msk.mxu0 %vm3087_vm2, %v6168_v37 }
0x101c   :  { %3573 = vmatmul.mubr.f32.gmra.mrb[50].mxu0 %v3423_v56 }
0x101d   :  { %3648 = vmatprep.mubr.f32.mxu0 %v5528_v10 }
0x10cb   :  { %v4328_v63 = vpop.f32.mrb[44].mxu0 }
0x10cc   :  { %v4329_v4 = vpop.f32.mrb[45].mxu0 }
0x10cd   :  { %v4330_v5 = vadd.f32 %v4329_v4, %v4328_v63  ;;  %v3786_v63 = vsub.s32 3, %v3773_v54 }
0x10cf   :  { %v4331_v8 = vpop.f32.mrb[46].mxu0 }
0x10d0   :  { %v4332_v9 = vpop.f32.mrb[47].mxu0 }
0x10d1   :  { %v4333_v16 = vadd.f32 %v4332_v9, %v4331_v8 }
0x10eb   :  { %v4366_v17 = vpop.f32.mrb[48].mxu0 }
0x10ec   :  { %v4367_v23 = vpop.f32.mrb[49].mxu0 }
0x10ed   :  { %v4368_v24 = vadd.f32 %v4367_v23, %v4366_v17  ;;  %v3783_v23 = vrot.slane %v3770_v61, %v3782_v55 }
0x10ef   :  { %v3570_v32 = vadd.f32 %v4368_v24, %v4330_v5  ;;  %v4369_v34 = vpop.f32.mrb[50].mxu0 }
0x10f0   :  { %v4370_v46 = vpop.f32.mrb[51].mxu0 }
0x10f1   :  { %v4371_v48 = vadd.f32 %v4370_v46, %v4369_v34  ;;  %4123 = vmatmul.mubr.msk.f32.vlgmr.msra.gmra.mrb[52].mxu0 %vm3080_vm3, %v3570_v32  ;;  %v3787_v34 = vrot.slane %v3770_v61, %v3786_v63 }
0x10f2   :  { %3654 = vmatprep.mubr.f32.mxu0 %v5528_v10  ;;  %4126 = vmatpush1.msk.msra.mxu0 %vm3087_vm2, %v6164_v44 }
0x10f3   :  { %v3575_v57 = vadd.f32 %v4371_v48, %v4333_v16 }
0x10f5   :  { %4124 = vmatmul.mubr.msk.f32.gmra.mrb[54].mxu0 %vm3080_vm3, %v3575_v57 }
0x10f6   :  { %3725 = vmatprep.mubr.f32.mxu0 %v5528_v10 }
0x10f9   :  { %4127 = vmatmul.mubr.msk.f32.vlgmr.msra.gmra.mrb[56].mxu0 %vm3080_vm3, %v3570_v32 }
0x10fa   :  { %3731 = vmatprep.mubr.f32.mxu0 %v5528_v10 }
0x10fd   :  { %4128 = vmatmul.mubr.msk.f32.gmra.mrb[58].mxu0 %vm3080_vm3, %v3575_v57 }
0x11c4   :  { %v3650_v59 = vpop.f32.mrb[52].mxu0 }
0x11c5   :  { %v3738_v6 = vmul.f32 0.0009765625, %v3650_v59  ;;  %v3652_v22 = vpop.f32.mrb[53].mxu0  ;;  %v3813_v59 = vrot.slane %v3800_v29, %v3782_v55 }
0x11c6   :  { %v3739_v15 = vmul.f32 0.0009765625, %v3652_v22  ;;  %v3817_v22 = vrot.slane %v3800_v29, %v3786_v63 }
0x11c7   :  { %v3746_v25 = vadd.f32 1e-05, %v3738_v6 }
0x11c8   :  { %v3747_v26 = vadd.f32 1e-05, %v3739_v15  ;;  %v3656_v39 = vpop.f32.mrb[54].mxu0 }
0x11c9   :  { %4996 = vrsqrt.f32 %v3746_v25  ;;  %v3742_v41 = vmul.f32 0.0009765625, %v3656_v39  ;;  %v3658_v53 = vpop.f32.mrb[55].mxu0 }
0x11ca   :  { %4998 = vrsqrt.f32 %v3747_v26  ;;  %v3743_v0 = vmul.f32 0.0009765625, %v3658_v53 }
0x11cb   :  { %v3750_v12 = vadd.f32 1e-05, %v3742_v41 }
0x11cc   :  { %v3751_v19 = vadd.f32 1e-05, %v3743_v0  ;;  %v3727_v44 = vpop.f32.mrb[56].mxu0 }
0x11cd   :  { %5000 = vrsqrt.f32 %v3750_v12  ;;  %v3740_v10 = vmul.f32 0.0009765625, %v3727_v44  ;;  %v3729_v37 = vpop.f32.mrb[57].mxu0 }
0x11ce   :  { %5002 = vrsqrt.f32 %v3751_v19  ;;  %v3741_v30 = vmul.f32 0.0009765625, %v3729_v37 }
0x11cf   :  { %v3748_v31 = vadd.f32 1e-05, %v3740_v10 }
0x11d0   :  { %v3749_v3 = vadd.f32 1e-05, %v3741_v30  ;;  %v3733_v7 = vpop.f32.mrb[58].mxu0 }
0x11d1   :  { %5004 = vrsqrt.f32 %v3748_v31  ;;  %v3744_v20 = vmul.f32 0.0009765625, %v3733_v7  ;;  %v3735_v21 = vpop.f32.mrb[59].mxu0 }
0x11d2   :  { %5006 = vrsqrt.f32 %v3749_v3  ;;  %v3745_v36 = vmul.f32 0.0009765625, %v3735_v21 }
0x11d3   :  { %v4997_v60 = vpop.eup %4996  ;;  %v3752_v13 = vadd.f32 1e-05, %v3744_v20 }
0x11d4   :  { %v4999_v58 = vpop.eup %4998  ;;  %v3762_v40 = vmul.f32 %v4997_v60, %v6183_v11  ;;  %v3753_v43 = vadd.f32 1e-05, %v3745_v36 }
0x11d5   :  { %v3763_v42 = vmul.f32 %v4999_v58, %v6186_v18  ;;  %5008 = vrsqrt.f32 %v3752_v13 }
0x11d6   :  { %v3792_v50 = vmul.f32 %v3775_v27, %v3762_v40  ;;  %5010 = vrsqrt.f32 %v3753_v43 }
0x11d7   :  { %v5001_v56 = vpop.eup %5000  ;;  %v3793_v62 = vmul.f32 %v3779_v52, %v3763_v42 }
0x11d8   :  { %v5003_v4 = vpop.eup %5002  ;;  %v3822_v5 = vadd.f32 %v3805_v35, %v3792_v50  ;;  %v3766_v8 = vmul.f32 %v5001_v56, %v6189_v45 }
0x11d9   :  { %v3823_v9 = vadd.f32 %v3809_v49, %v3793_v62  ;;  %v3767_v16 = vmul.f32 %v5003_v4, %v6192_v47 }
0x11da   :  { %v3830_v11 = vmax.f32 %v3822_v5, 0.0  ;;  %v3796_v17 = vmul.f32 %v3775_v27, %v3766_v8 }
0x11db   :  { %v5005_v24 = vpop.eup %5004  ;;  %v3831_v18 = vmax.f32 %v3823_v9, 0.0  ;;  %v3797_v32 = vmul.f32 %v3779_v52, %v3767_v16 }
0x11dc   :  { %v5007_v46 = vpop.eup %5006  ;;  %3838 = vst [vmem:[#allocation34] sm:$0xff] %v3830_v11  ;;  %v3826_v48 = vadd.f32 %v3805_v35, %v3796_v17  ;;  %v3764_v57 = vmul.f32 %v5005_v24, %v6203_v2 }
0x11dd   :  { %3839 = vst [vmem:[#allocation34 + $0x8] sm:$0xff] %v3831_v18  ;;  %v3827_v6 = vadd.f32 %v3809_v49, %v3797_v32  ;;  %v3765_v45 = vmul.f32 %v5007_v46, %v6206_v33 }
0x11de   :  { %v3834_v14 = vmax.f32 %v3826_v48, 0.0  ;;  %v3794_v47 = vmul.f32 %v3783_v23, %v3764_v57 }
0x11df   :  { %v5009_v15 = vpop.eup %5008  ;;  %v3835_v25 = vmax.f32 %v3827_v6, 0.0  ;;  %v3795_v26 = vmul.f32 %v3787_v34, %v3765_v45 }
0x11e0   :  { %v5011_v39 = vpop.eup %5010  ;;  %3842 = vst [vmem:[#allocation34 + $0x20] sm:$0xff] %v3834_v14  ;;  %v3824_v41 = vadd.f32 %v3813_v59, %v3794_v47  ;;  %v3768_v53 = vmul.f32 %v5009_v15, %v6209_v38 }
0x11e1   :  { %3843 = vst [vmem:[#allocation34 + $0x28] sm:$0xff] %v3835_v25  ;;  %v3825_v54 = vadd.f32 %v3817_v22, %v3795_v26  ;;  %v3769_v2 = vmul.f32 %v5011_v39, %v6212_v51 }
0x11e2   :  { %v3832_v0 = vmax.f32 %v3824_v41, 0.0  ;;  %v3798_v12 = vmul.f32 %v3783_v23, %v3768_v53 }
0x11e3   :  { %v3833_v19 = vmax.f32 %v3825_v54, 0.0  ;;  %v3799_v44 = vmul.f32 %v3787_v34, %v3769_v2 }
0x11e4   :  { %3840 = vst [vmem:[#allocation34 + $0x10] sm:$0xff] %v3832_v0  ;;  %v3828_v33 = vadd.f32 %v3813_v59, %v3798_v12 }
0x11e5   :  { %3841 = vst [vmem:[#allocation34 + $0x18] sm:$0xff] %v3833_v19  ;;  %v3829_v10 = vadd.f32 %v3817_v22, %v3799_v44 }
0x11e6   :  { %v3836_v37 = vmax.f32 %v3828_v33, 0.0 }
0x11e7   :  { %v3837_v28 = vmax.f32 %v3829_v10, 0.0 }
0x11e8   :  { %3844 = vst [vmem:[#allocation34 + $0x30] sm:$0xff] %v3836_v37 }
0x11e9   :  { %3845 = vst [vmem:[#allocation34 + $0x38] sm:$0xff] %v3837_v28 }
0x11ea   :  { %5465 = shalt.err (!%p5462_p10)
}
0x11eb   :  { %s6348_s27 = sld [smem:[#allocation54_spill]] }
0x11f1   :  { %s5466_s20 = scalar_lea.hbm %s6348_s27, 1024 }
0x11f2   :  { %p5467_p11 = scmp.ne.s32.totalorder %s6348_s27, %s5466_s20  ;;  %p5470_p12 = scmp.lt.u32.totalorder %s5466_s20, %s6348_s27 }
0x11f4   :  { %p5472_p13 = pnand %p5470_p12, %p5467_p11 }
0x11f6   :  { %5475 = shalt.err (!%p5472_p13)
}
0x11f7   :  { %3857 = dma.vmem_to_hbm [thread:$0]  %s3852_s14, 1024, %s6348_s27, [#allocation4], %s5516_s17, %s5516_s17, %s5517_s3  }
0x11f8   :  { %5498 = dma.done.wait [#allocation4], 1024  }
0x11f9   :  { %5499 = vsyncadd [#allocation4], 4294966272 }
0x11fa   :  { %3861 = vsyncpa [#allocation3], 1 }
0x11fb   :  { %3862 = vsyncpa [#allocation6], 1 }
0x11fc   :  { %3863 = vsyncpa [#allocation9], 1 }
0x11fd   :  { %3864 = vsyncpa [#allocation12], 1 }
0x11fe   :  { %3865 = vsyncpa [#allocation15], 1 }
0x11ff   :  { %3866 = vsyncpa [#allocation18], 1 }
0x1200   :  { %3867 = vsyncpa [#allocation21], 1 }
0x1201   :  { %3868 = vsyncpa [#allocation24], 1 }
0x1202   :  { %3869 = vsyncpa [#allocation27], 1 }
0x1203   :  { %3870 = vsyncpa [#allocation30], 1 }
0x1204   :  { %3871 = vsyncpa [#allocation33], 1 }
0x1205   :  { %3872 = vsyncpa [#allocation4], 1 }

</bundles_post_ra>
